<compile_context>
chip_gen: v7x
topology: tpu7x:2x2x1
jax: 0.10.0
libtpu: 0.0.40
codegen_flags: <defaults>
</compile_context>

<pallas_src>
import functools

import jax
import jax.numpy as jnp
from jax.experimental import pallas as pl
from jax.experimental.pallas import tpu as pltpu

LN_EPS = 1e-5  # nn.LayerNorm default


def _round_up(x: int, m: int) -> int:
    return (x + m - 1) // m * m


def _pad2d(a, rows: int, cols: int):
    r, c = a.shape
    if rows == r and cols == c:
        return a
    return jnp.pad(a, ((0, rows - r), (0, cols - c)))


def _layernorm_padded(x, gamma, beta, true_f: int, padded_f: int):
    """LayerNorm over the last axis where only the first `true_f` columns hold
    real data and the remaining (padded) columns are exactly zero.

    Two-pass: mean first (zero padding does not perturb the sum; divide by the
    true feature count), then center, mask out padded columns, and take the
    sum of squares.  gamma/beta are zero in padded columns, so padded columns
    stay exactly zero on output (safe for the next matmul)."""
    inv_n = 1.0 / float(true_f)
    mean = jnp.sum(x, axis=-1, keepdims=True) * inv_n
    cx = x - mean
    if padded_f != true_f:
        lane = jax.lax.broadcasted_iota(jnp.int32, (1, padded_f), 1)
        cx = jnp.where(lane < true_f, cx, 0.0)
    var = jnp.sum(cx * cx, axis=-1, keepdims=True) * inv_n
    inv = jax.lax.rsqrt(var + LN_EPS)
    return cx * inv * gamma + beta


def _kpe_kernel(x_ref, w1, p1, w2, p2, w3, p3, w4, p4, o_ref, *,
                residual: bool, true_dims, padded_dims, mxu_dtype):
    """Fused MLP over one (row_tile, Cp) tile of rows.

    p_i = packed [bias; gamma; beta (; resid_bias for layer 4)] (f32 rows).
    When residual=True, w1 is the concatenation [W1 | Wr] along the output
    axis, so the first matmul also produces the residual term."""
    f1, f2, f3, f4 = true_dims
    f1p, f2p, f3p, f4p = padded_dims

    x_mx = x_ref[...]                                  # already mxu_dtype (bf16)

    def finish(h, p_ref, true_f, padded_f, relu):
        h = h + p_ref[0:1, :]                          # bias (f32)
        h = _layernorm_padded(h, p_ref[1:2, :], p_ref[2:3, :], true_f, padded_f)
        if relu:
            h = jnp.maximum(h, 0.0)
        return h

    # Layer 1 (+ residual matmul fused into the same MXU pass).
    h_full = jnp.dot(x_mx, w1[...], preferred_element_type=jnp.float32)
    if residual:
        h = h_full[:, :f1p]                            # 128-aligned lane slice
        r = h_full[:, f1p:]                            # residual term, f32
    else:
        h = h_full
        r = None
    h = finish(h, p1, f1, f1p, True)                   # LN + ReLU

    h = jnp.dot(h.astype(mxu_dtype), w2[...], preferred_element_type=jnp.float32)
    h = finish(h, p2, f2, f2p, True)                   # Linear(4C->4D)+LN+ReLU

    h = jnp.dot(h.astype(mxu_dtype), w3[...], preferred_element_type=jnp.float32)
    h = finish(h, p3, f3, f3p, True)                   # Linear(4D->2D)+LN+ReLU

    h = jnp.dot(h.astype(mxu_dtype), w4[...], preferred_element_type=jnp.float32)
    h = finish(h, p4, f4, f4p, False)                  # Linear(2D->D)+LN

    if residual:
        h = h + r + p4[3:4, :]                         # resid bias (f32)

    o_ref[...] = jnp.tanh(h).astype(o_ref.dtype)


def keypoint_embedding_dense(pose_clip, params, *, residual: bool,
                             row_tile: int = 512, mxu_dtype=jnp.bfloat16,
                             out_dtype=jnp.float32):
    """pose_clip: (T, B, C) float32.  Returns (T, B, D) out_dtype (f32 default;
    pass out_dtype=jnp.bfloat16 to halve HBM writeback if the consumer allows)."""
    t, b, c = pose_clip.shape
    d = params["w4"].shape[1]
    n = t * b

    dims = (4 * c, 4 * d, 2 * d, d)                  # true LN feature counts
    cp = _round_up(c, 128)
    fps = tuple(_round_up(f, 128) for f in dims)     # lane-dense (128) widths
    dp = fps[-1]
    w1_cols = fps[0] + (dp if residual else 0)

    in_isz = jnp.dtype(mxu_dtype).itemsize
    out_isz = jnp.dtype(out_dtype).itemsize

    # ---- padded weights (bf16) and packed bias/gamma/beta rows (f32) --------
    layer_io = [(c, cp, dims[0], fps[0]),
                (dims[0], fps[0], dims[1], fps[1]),
                (dims[1], fps[1], dims[2], fps[2]),
                (dims[2], fps[2], dims[3], fps[3])]
    weights, packed = [], []
    for li, (_fi, fip, _fo, fop) in enumerate(layer_io, start=1):
        w = _pad2d(params[f"w{li}"].astype(jnp.float32), fip, fop)
        if residual and li == 1:
            wr = _pad2d(params["wr"].astype(jnp.float32), cp, dp)
            w = jnp.concatenate([w, wr], axis=1)       # [W1 | Wr]: shared LHS
        weights.append(w.astype(mxu_dtype))
        rows = [params[f"b{li}"], params[f"g{li}"], params[f"be{li}"]]
        if residual and li == 4:
            rows.append(params["br"])
        pk = jnp.concatenate(
            [r.reshape(1, -1).astype(jnp.float32) for r in rows], axis=0)
        packed.append(_pad2d(pk, pk.shape[0], fop))    # pads bias/gamma/beta w/ 0

    param_bytes = sum(int(w.size) * in_isz for w in weights)
    param_bytes += sum(int(p.size) * 4 for p in packed)

    # ---- row-tile selection --------------------------------------------------
    n128 = _round_up(n, 128)
    row_tile = max(128, min(_round_up(row_tile, 128), n128))
    # Megacore (v7x): keep >= 2 grid steps when there is enough work.
    if n128 >= 256 and _round_up(n, row_tile) // row_tile < 2:
        row_tile = max(128, _round_up(n128 // 2, 128))

    max_fp = max(cp, w1_cols, *fps)

    def vmem_need(rt):
        # double-buffered bf16 input + out_dtype output, single-buffered params,
        # plus live f32 intermediates inside the body.
        io = 2 * rt * cp * in_isz + 2 * rt * dp * out_isz
        live = 6 * rt * max_fp * 4 + (rt * dp * 4 if residual else 0)
        return io + param_bytes + live + (2 << 20)

    try:
        phys_vmem = int(pltpu.get_tpu_info().vmem_capacity_bytes)
    except Exception:
        phys_vmem = 64 << 20                           # conservative (v7x)
    budget = phys_vmem - (8 << 20)
    while row_tile > 128 and vmem_need(row_tile) > budget:
        row_tile = max(128, _round_up(row_tile // 2, 128))

    n_pad = _round_up(n, row_tile)
    # Always set the limit explicitly (v5e default is only 16 MiB), capped at
    # the physical VMEM of the generation we are running on.
    vmem_limit = int(min(max(vmem_need(row_tile) + (8 << 20), 32 << 20), budget))

    # ---- input prep: cast to bf16, pad only when shapes require it ----------
    x2d = pose_clip.reshape(n, c).astype(mxu_dtype)
    x2d = _pad2d(x2d, n_pad, cp)

    # ---- specs ---------------------------------------------------------------
    def resident_spec(a):
        # whole-array block, constant index_map -> stays resident; single-buffer
        # so we don't waste a second VMEM copy on data that never changes.
        return pl.BlockSpec(a.shape, lambda i: (0, 0),
                            pipeline_mode=pl.Buffered(1))

    operands = [x2d]
    in_specs = [pl.BlockSpec((row_tile, cp), lambda i: (i, 0))]
    for w, pk in zip(weights, packed):
        operands += [w, pk]
        in_specs += [resident_spec(w), resident_spec(pk)]
    out_spec = pl.BlockSpec((row_tile, dp), lambda i: (i, 0))

    # ---- advisory cost estimate ---------------------------------------------
    mm = cp * w1_cols + fps[0] * fps[1] + fps[1] * fps[2] + fps[2] * fps[3]
    cost = pl.CostEstimate(
        flops=2 * n_pad * mm,
        transcendentals=n_pad * (dp + 4),
        bytes_accessed=n_pad * cp * in_isz + n_pad * dp * out_isz + param_bytes,
    )

    kernel = functools.partial(_kpe_kernel, residual=residual,
                               true_dims=dims, padded_dims=fps,
                               mxu_dtype=mxu_dtype)

    out2d = pl.pallas_call(
        kernel,
        out_shape=jax.ShapeDtypeStruct((n_pad, dp), out_dtype),
        grid_spec=pltpu.PrefetchScalarGridSpec(
            num_scalar_prefetch=0,
            grid=(n_pad // row_tile,),
            in_specs=in_specs,
            out_specs=out_spec,
        ),
        compiler_params=pltpu.CompilerParams(
            dimension_semantics=("parallel",),
            vmem_limit_bytes=vmem_limit,
        ),
        cost_estimate=cost,
    )(*operands)

    if n_pad != n or dp != d:
        out2d = out2d[:n, :d]
    return out2d.reshape(t, b, d)


def init_params(key, in_features: int, d_embed: int):
    """Deterministic synthetic parameters (shapes match the PyTorch module)."""
    c, d = in_features, d_embed
    dims = [(c, 4 * c), (4 * c, 4 * d), (4 * d, 2 * d), (2 * d, d)]
    params = {}
    keys = jax.random.split(key, 16)
    ki = 0
    for li, (fin, fout) in enumerate(dims, start=1):
        scale = 1.0 / jnp.sqrt(jnp.float32(fin))
        params[f"w{li}"] = jax.random.uniform(
            keys[ki], (fin, fout), jnp.float32, -scale, scale); ki += 1
        params[f"b{li}"] = jax.random.uniform(
            keys[ki], (1, fout), jnp.float32, -scale, scale); ki += 1
        params[f"g{li}"] = jnp.ones((1, fout), jnp.float32)    # LN gamma = 1
        params[f"be{li}"] = jnp.zeros((1, fout), jnp.float32)  # LN beta  = 0
    scale = 1.0 / jnp.sqrt(jnp.float32(c))
    params["wr"] = jax.random.uniform(keys[ki], (c, d), jnp.float32, -scale, scale); ki += 1
    params["br"] = jax.random.uniform(keys[ki], (1, d), jnp.float32, -scale, scale); ki += 1
    return params


def reference_forward(pose_clip, params, *, residual: bool,
                      matmul_dtype=jnp.float32):
    """Pure-JAX reference of the PyTorch forward (eval mode).

    matmul_dtype=bfloat16 emulates the kernel's bf16 MXU operands (with f32
    accumulation), enabling a tight kernel-mechanics check."""
    t, b, c = pose_clip.shape
    x = pose_clip.reshape(t * b, c)

    def ln(v, g, be):
        m = jnp.mean(v, -1, keepdims=True)
        var = jnp.mean((v - m) ** 2, -1, keepdims=True)
        return (v - m) * jax.lax.rsqrt(var + LN_EPS) * g + be

    def mm(a, w):
        return jnp.dot(a.astype(matmul_dtype), w.astype(matmul_dtype),
                       preferred_element_type=jnp.float32)

    h = x
    for li in range(1, 5):
        h = mm(h, params[f"w{li}"]) + params[f"b{li}"]
        h = ln(h, params[f"g{li}"], params[f"be{li}"])
        if li < 4:
            h = jnp.maximum(h, 0.0)
    h = h.reshape(t, b, -1)
    if residual:
        h = h + (mm(x, params["wr"]) + params["br"]).reshape(t, b, -1)
    return jnp.tanh(h)


if __name__ == "__main__":
    # Small shapes: t=8, b=2, in_features=16, d_embed=32
    T, B, C, D = 8, 2, 16, 32
    RESIDUAL = True

    key = jax.random.PRNGKey(0)
    k_x, k_p = jax.random.split(key)
    pose_clip = jax.random.normal(k_x, (T, B, C), jnp.float32)
    params = init_params(k_p, C, D)

    out = keypoint_embedding_dense(pose_clip, params, residual=RESIDUAL)
    out = jax.block_until_ready(out)
    assert out.shape == (T, B, D)

    # Tight check against a reference that emulates the kernel's bf16 MXU
    # operands (f32 accumulation, f32 LN/ReLU/tanh) -> validates the kernel
    # mechanics (tiling, padding, fused residual matmul, masked two-pass LN).
    ref_bf16 = reference_forward(pose_clip, params, residual=RESIDUAL,
                                 matmul_dtype=jnp.bfloat16)
    assert jnp.allclose(out, ref_bf16, atol=2e-3, rtol=2e-3), \
        "mismatch vs bf16-emulating reference"

    # Loose sanity check against the pure-f32 reference; bf16 MXU operands
    # relax the element-wise tolerance.
    ref_f32 = reference_forward(pose_clip, params, residual=RESIDUAL,
                                matmul_dtype=jnp.float32)
    assert float(jnp.max(jnp.abs(out - ref_f32))) < 1.5e-1, \
        "bf16 drift vs f32 reference too large"

    print("KERNEL_OK")
</pallas_src>

<mosaic_0001>
module attributes {stable_mosaic.version = 11 : i64} {
  func.func @_kpe_kernel(%arg0: i32, %arg1: memref<128x128xbf16, #tpu.memory_space<vmem>>, %arg2: memref<128x256xbf16, #tpu.memory_space<vmem>>, %arg3: memref<3x128xf32, #tpu.memory_space<vmem>>, %arg4: memref<128x128xbf16, #tpu.memory_space<vmem>>, %arg5: memref<3x128xf32, #tpu.memory_space<vmem>>, %arg6: memref<128x128xbf16, #tpu.memory_space<vmem>>, %arg7: memref<3x128xf32, #tpu.memory_space<vmem>>, %arg8: memref<128x128xbf16, #tpu.memory_space<vmem>>, %arg9: memref<4x128xf32, #tpu.memory_space<vmem>>, %arg10: memref<128x128xf32, #tpu.memory_space<vmem>>) attributes {dimension_semantics = [#tpu.dimension_semantics<parallel>], iteration_bounds = array<i64: 1>, scalar_prefetch = 0 : i64, scratch_operands = 0 : i64, tpu.core_type = #tpu.core_type<tc>, window_params = [{transform_indices = @transform_0, window_bounds = array<i64: 128, 128>}, {pipeline_mode = #tpu.pipeline_mode<synchronous>, transform_indices = @transform_1, window_bounds = array<i64: 128, 256>}, {pipeline_mode = #tpu.pipeline_mode<synchronous>, transform_indices = @transform_2, window_bounds = array<i64: 3, 128>}, {pipeline_mode = #tpu.pipeline_mode<synchronous>, transform_indices = @transform_3, window_bounds = array<i64: 128, 128>}, {pipeline_mode = #tpu.pipeline_mode<synchronous>, transform_indices = @transform_4, window_bounds = array<i64: 3, 128>}, {pipeline_mode = #tpu.pipeline_mode<synchronous>, transform_indices = @transform_5, window_bounds = array<i64: 128, 128>}, {pipeline_mode = #tpu.pipeline_mode<synchronous>, transform_indices = @transform_6, window_bounds = array<i64: 3, 128>}, {pipeline_mode = #tpu.pipeline_mode<synchronous>, transform_indices = @transform_7, window_bounds = array<i64: 128, 128>}, {pipeline_mode = #tpu.pipeline_mode<synchronous>, transform_indices = @transform_8, window_bounds = array<i64: 4, 128>}, {transform_indices = @transform_9, window_bounds = array<i64: 128, 128>}]} {
    %c0 = arith.constant 0 : index
    %c0_0 = arith.constant 0 : index
    %0 = vector.load %arg1[%c0, %c0_0] : memref<128x128xbf16, #tpu.memory_space<vmem>>, vector<128x128xbf16>
    %c0_1 = arith.constant 0 : index
    %c0_2 = arith.constant 0 : index
    %1 = vector.load %arg2[%c0_1, %c0_2] : memref<128x256xbf16, #tpu.memory_space<vmem>>, vector<128x256xbf16>
    %cst = arith.constant dense<0.000000e+00> : vector<128x256xf32>
    %2 = tpu.matmul %0, %1, %cst {dimension_numbers = #tpu.dot_dimension_numbers<[1], [0], [0], [1], [0, 0, 1, 1], [], []>} : vector<128x128xbf16>, vector<128x256xbf16>, vector<128x256xf32> -> vector<128x256xf32>
    %3 = vector.extract_strided_slice %2 {offsets = [0, 0], sizes = [128, 128], strides = [1, 1]} : vector<128x256xf32> to vector<128x128xf32>
    %4 = vector.extract_strided_slice %2 {offsets = [0, 128], sizes = [128, 128], strides = [1, 1]} : vector<128x256xf32> to vector<128x128xf32>
    %c0_3 = arith.constant 0 : index
    %c0_4 = arith.constant 0 : index
    %5 = vector.load %arg3[%c0_3, %c0_4] : memref<3x128xf32, #tpu.memory_space<vmem>>, vector<1x128xf32>
    %6 = vector.broadcast %5 : vector<1x128xf32> to vector<128x128xf32>
    %7 = arith.addf %3, %6 : vector<128x128xf32>
    %c1 = arith.constant 1 : index
    %c0_5 = arith.constant 0 : index
    %8 = vector.load %arg3[%c1, %c0_5] : memref<3x128xf32, #tpu.memory_space<vmem>>, vector<1x128xf32>
    %c2 = arith.constant 2 : index
    %c0_6 = arith.constant 0 : index
    %9 = vector.load %arg3[%c2, %c0_6] : memref<3x128xf32, #tpu.memory_space<vmem>>, vector<1x128xf32>
    %cst_7 = arith.constant dense<0.000000e+00> : vector<128xf32>
    %10 = vector.multi_reduction <add>, %7, %cst_7 [1] : vector<128x128xf32> to vector<128xf32>
    %11 = vector.shape_cast %10 : vector<128xf32> to vector<128x1xf32>
    %cst_8 = arith.constant 1.562500e-02 : f32
    %12 = vector.broadcast %cst_8 : f32 to vector<128x1xf32>
    %13 = arith.mulf %11, %12 : vector<128x1xf32>
    %14 = vector.broadcast %13 : vector<128x1xf32> to vector<128x128xf32>
    %15 = arith.subf %7, %14 : vector<128x128xf32>
    %16 = tpu.iota {dimensions = array<i32: 1>} : vector<1x128xi32>
    %c64_i32 = arith.constant 64 : i32
    %17 = vector.broadcast %c64_i32 : i32 to vector<1x128xi32>
    %18 = arith.cmpi slt, %16, %17 : vector<1x128xi32>
    %cst_9 = arith.constant 0.000000e+00 : f32
    %19 = vector.shape_cast %18 : vector<1x128xi1> to vector<1x128xi1>
    %20 = vector.broadcast %19 : vector<1x128xi1> to vector<128x128xi1>
    %21 = vector.broadcast %cst_9 : f32 to vector<128x128xf32>
    %22 = arith.select %20, %15, %21 : vector<128x128xi1>, vector<128x128xf32>
    %23 = arith.mulf %22, %22 : vector<128x128xf32>
    %cst_10 = arith.constant dense<0.000000e+00> : vector<128xf32>
    %24 = vector.multi_reduction <add>, %23, %cst_10 [1] : vector<128x128xf32> to vector<128xf32>
    %25 = vector.shape_cast %24 : vector<128xf32> to vector<128x1xf32>
    %cst_11 = arith.constant 1.562500e-02 : f32
    %26 = vector.broadcast %cst_11 : f32 to vector<128x1xf32>
    %27 = arith.mulf %25, %26 : vector<128x1xf32>
    %cst_12 = arith.constant 9.99999974E-6 : f32
    %28 = vector.broadcast %cst_12 : f32 to vector<128x1xf32>
    %29 = arith.addf %27, %28 : vector<128x1xf32>
    %30 = math.rsqrt %29 : vector<128x1xf32>
    %31 = vector.broadcast %30 : vector<128x1xf32> to vector<128x128xf32>
    %32 = arith.mulf %22, %31 : vector<128x128xf32>
    %33 = vector.broadcast %8 : vector<1x128xf32> to vector<128x128xf32>
    %34 = arith.mulf %32, %33 : vector<128x128xf32>
    %35 = vector.broadcast %9 : vector<1x128xf32> to vector<128x128xf32>
    %36 = arith.addf %34, %35 : vector<128x128xf32>
    %cst_13 = arith.constant 0.000000e+00 : f32
    %37 = vector.broadcast %cst_13 : f32 to vector<128x128xf32>
    %38 = arith.maximumf %36, %37 : vector<128x128xf32>
    %39 = arith.truncf %38 : vector<128x128xf32> to vector<128x128xbf16>
    %c0_14 = arith.constant 0 : index
    %c0_15 = arith.constant 0 : index
    %40 = vector.load %arg4[%c0_14, %c0_15] : memref<128x128xbf16, #tpu.memory_space<vmem>>, vector<128x128xbf16>
    %cst_16 = arith.constant dense<0.000000e+00> : vector<128x128xf32>
    %41 = tpu.matmul %39, %40, %cst_16 {dimension_numbers = #tpu.dot_dimension_numbers<[1], [0], [0], [1], [0, 0, 1, 1], [], []>} : vector<128x128xbf16>, vector<128x128xbf16>, vector<128x128xf32> -> vector<128x128xf32>
    %c0_17 = arith.constant 0 : index
    %c0_18 = arith.constant 0 : index
    %42 = vector.load %arg5[%c0_17, %c0_18] : memref<3x128xf32, #tpu.memory_space<vmem>>, vector<1x128xf32>
    %43 = vector.broadcast %42 : vector<1x128xf32> to vector<128x128xf32>
    %44 = arith.addf %41, %43 : vector<128x128xf32>
    %c1_19 = arith.constant 1 : index
    %c0_20 = arith.constant 0 : index
    %45 = vector.load %arg5[%c1_19, %c0_20] : memref<3x128xf32, #tpu.memory_space<vmem>>, vector<1x128xf32>
    %c2_21 = arith.constant 2 : index
    %c0_22 = arith.constant 0 : index
    %46 = vector.load %arg5[%c2_21, %c0_22] : memref<3x128xf32, #tpu.memory_space<vmem>>, vector<1x128xf32>
    %cst_23 = arith.constant dense<0.000000e+00> : vector<128xf32>
    %47 = vector.multi_reduction <add>, %44, %cst_23 [1] : vector<128x128xf32> to vector<128xf32>
    %48 = vector.shape_cast %47 : vector<128xf32> to vector<128x1xf32>
    %cst_24 = arith.constant 7.812500e-03 : f32
    %49 = vector.broadcast %cst_24 : f32 to vector<128x1xf32>
    %50 = arith.mulf %48, %49 : vector<128x1xf32>
    %51 = vector.broadcast %50 : vector<128x1xf32> to vector<128x128xf32>
    %52 = arith.subf %44, %51 : vector<128x128xf32>
    %53 = arith.mulf %52, %52 : vector<128x128xf32>
    %cst_25 = arith.constant dense<0.000000e+00> : vector<128xf32>
    %54 = vector.multi_reduction <add>, %53, %cst_25 [1] : vector<128x128xf32> to vector<128xf32>
    %55 = vector.shape_cast %54 : vector<128xf32> to vector<128x1xf32>
    %cst_26 = arith.constant 7.812500e-03 : f32
    %56 = vector.broadcast %cst_26 : f32 to vector<128x1xf32>
    %57 = arith.mulf %55, %56 : vector<128x1xf32>
    %cst_27 = arith.constant 9.99999974E-6 : f32
    %58 = vector.broadcast %cst_27 : f32 to vector<128x1xf32>
    %59 = arith.addf %57, %58 : vector<128x1xf32>
    %60 = math.rsqrt %59 : vector<128x1xf32>
    %61 = vector.broadcast %60 : vector<128x1xf32> to vector<128x128xf32>
    %62 = arith.mulf %52, %61 : vector<128x128xf32>
    %63 = vector.broadcast %45 : vector<1x128xf32> to vector<128x128xf32>
    %64 = arith.mulf %62, %63 : vector<128x128xf32>
    %65 = vector.broadcast %46 : vector<1x128xf32> to vector<128x128xf32>
    %66 = arith.addf %64, %65 : vector<128x128xf32>
    %cst_28 = arith.constant 0.000000e+00 : f32
    %67 = vector.broadcast %cst_28 : f32 to vector<128x128xf32>
    %68 = arith.maximumf %66, %67 : vector<128x128xf32>
    %69 = arith.truncf %68 : vector<128x128xf32> to vector<128x128xbf16>
    %c0_29 = arith.constant 0 : index
    %c0_30 = arith.constant 0 : index
    %70 = vector.load %arg6[%c0_29, %c0_30] : memref<128x128xbf16, #tpu.memory_space<vmem>>, vector<128x128xbf16>
    %cst_31 = arith.constant dense<0.000000e+00> : vector<128x128xf32>
    %71 = tpu.matmul %69, %70, %cst_31 {dimension_numbers = #tpu.dot_dimension_numbers<[1], [0], [0], [1], [0, 0, 1, 1], [], []>} : vector<128x128xbf16>, vector<128x128xbf16>, vector<128x128xf32> -> vector<128x128xf32>
    %c0_32 = arith.constant 0 : index
    %c0_33 = arith.constant 0 : index
    %72 = vector.load %arg7[%c0_32, %c0_33] : memref<3x128xf32, #tpu.memory_space<vmem>>, vector<1x128xf32>
    %73 = vector.broadcast %72 : vector<1x128xf32> to vector<128x128xf32>
    %74 = arith.addf %71, %73 : vector<128x128xf32>
    %c1_34 = arith.constant 1 : index
    %c0_35 = arith.constant 0 : index
    %75 = vector.load %arg7[%c1_34, %c0_35] : memref<3x128xf32, #tpu.memory_space<vmem>>, vector<1x128xf32>
    %c2_36 = arith.constant 2 : index
    %c0_37 = arith.constant 0 : index
    %76 = vector.load %arg7[%c2_36, %c0_37] : memref<3x128xf32, #tpu.memory_space<vmem>>, vector<1x128xf32>
    %cst_38 = arith.constant dense<0.000000e+00> : vector<128xf32>
    %77 = vector.multi_reduction <add>, %74, %cst_38 [1] : vector<128x128xf32> to vector<128xf32>
    %78 = vector.shape_cast %77 : vector<128xf32> to vector<128x1xf32>
    %cst_39 = arith.constant 1.562500e-02 : f32
    %79 = vector.broadcast %cst_39 : f32 to vector<128x1xf32>
    %80 = arith.mulf %78, %79 : vector<128x1xf32>
    %81 = vector.broadcast %80 : vector<128x1xf32> to vector<128x128xf32>
    %82 = arith.subf %74, %81 : vector<128x128xf32>
    %83 = tpu.iota {dimensions = array<i32: 1>} : vector<1x128xi32>
    %c64_i32_40 = arith.constant 64 : i32
    %84 = vector.broadcast %c64_i32_40 : i32 to vector<1x128xi32>
    %85 = arith.cmpi slt, %83, %84 : vector<1x128xi32>
    %cst_41 = arith.constant 0.000000e+00 : f32
    %86 = vector.shape_cast %85 : vector<1x128xi1> to vector<1x128xi1>
    %87 = vector.broadcast %86 : vector<1x128xi1> to vector<128x128xi1>
    %88 = vector.broadcast %cst_41 : f32 to vector<128x128xf32>
    %89 = arith.select %87, %82, %88 : vector<128x128xi1>, vector<128x128xf32>
    %90 = arith.mulf %89, %89 : vector<128x128xf32>
    %cst_42 = arith.constant dense<0.000000e+00> : vector<128xf32>
    %91 = vector.multi_reduction <add>, %90, %cst_42 [1] : vector<128x128xf32> to vector<128xf32>
    %92 = vector.shape_cast %91 : vector<128xf32> to vector<128x1xf32>
    %cst_43 = arith.constant 1.562500e-02 : f32
    %93 = vector.broadcast %cst_43 : f32 to vector<128x1xf32>
    %94 = arith.mulf %92, %93 : vector<128x1xf32>
    %cst_44 = arith.constant 9.99999974E-6 : f32
    %95 = vector.broadcast %cst_44 : f32 to vector<128x1xf32>
    %96 = arith.addf %94, %95 : vector<128x1xf32>
    %97 = math.rsqrt %96 : vector<128x1xf32>
    %98 = vector.broadcast %97 : vector<128x1xf32> to vector<128x128xf32>
    %99 = arith.mulf %89, %98 : vector<128x128xf32>
    %100 = vector.broadcast %75 : vector<1x128xf32> to vector<128x128xf32>
    %101 = arith.mulf %99, %100 : vector<128x128xf32>
    %102 = vector.broadcast %76 : vector<1x128xf32> to vector<128x128xf32>
    %103 = arith.addf %101, %102 : vector<128x128xf32>
    %cst_45 = arith.constant 0.000000e+00 : f32
    %104 = vector.broadcast %cst_45 : f32 to vector<128x128xf32>
    %105 = arith.maximumf %103, %104 : vector<128x128xf32>
    %106 = arith.truncf %105 : vector<128x128xf32> to vector<128x128xbf16>
    %c0_46 = arith.constant 0 : index
    %c0_47 = arith.constant 0 : index
    %107 = vector.load %arg8[%c0_46, %c0_47] : memref<128x128xbf16, #tpu.memory_space<vmem>>, vector<128x128xbf16>
    %cst_48 = arith.constant dense<0.000000e+00> : vector<128x128xf32>
    %108 = tpu.matmul %106, %107, %cst_48 {dimension_numbers = #tpu.dot_dimension_numbers<[1], [0], [0], [1], [0, 0, 1, 1], [], []>} : vector<128x128xbf16>, vector<128x128xbf16>, vector<128x128xf32> -> vector<128x128xf32>
    %c0_49 = arith.constant 0 : index
    %c0_50 = arith.constant 0 : index
    %109 = vector.load %arg9[%c0_49, %c0_50] : memref<4x128xf32, #tpu.memory_space<vmem>>, vector<1x128xf32>
    %110 = vector.broadcast %109 : vector<1x128xf32> to vector<128x128xf32>
    %111 = arith.addf %108, %110 : vector<128x128xf32>
    %c1_51 = arith.constant 1 : index
    %c0_52 = arith.constant 0 : index
    %112 = vector.load %arg9[%c1_51, %c0_52] : memref<4x128xf32, #tpu.memory_space<vmem>>, vector<1x128xf32>
    %c2_53 = arith.constant 2 : index
    %c0_54 = arith.constant 0 : index
    %113 = vector.load %arg9[%c2_53, %c0_54] : memref<4x128xf32, #tpu.memory_space<vmem>>, vector<1x128xf32>
    %cst_55 = arith.constant dense<0.000000e+00> : vector<128xf32>
    %114 = vector.multi_reduction <add>, %111, %cst_55 [1] : vector<128x128xf32> to vector<128xf32>
    %115 = vector.shape_cast %114 : vector<128xf32> to vector<128x1xf32>
    %cst_56 = arith.constant 3.125000e-02 : f32
    %116 = vector.broadcast %cst_56 : f32 to vector<128x1xf32>
    %117 = arith.mulf %115, %116 : vector<128x1xf32>
    %118 = vector.broadcast %117 : vector<128x1xf32> to vector<128x128xf32>
    %119 = arith.subf %111, %118 : vector<128x128xf32>
    %120 = tpu.iota {dimensions = array<i32: 1>} : vector<1x128xi32>
    %c32_i32 = arith.constant 32 : i32
    %121 = vector.broadcast %c32_i32 : i32 to vector<1x128xi32>
    %122 = arith.cmpi slt, %120, %121 : vector<1x128xi32>
    %cst_57 = arith.constant 0.000000e+00 : f32
    %123 = vector.shape_cast %122 : vector<1x128xi1> to vector<1x128xi1>
    %124 = vector.broadcast %123 : vector<1x128xi1> to vector<128x128xi1>
    %125 = vector.broadcast %cst_57 : f32 to vector<128x128xf32>
    %126 = arith.select %124, %119, %125 : vector<128x128xi1>, vector<128x128xf32>
    %127 = arith.mulf %126, %126 : vector<128x128xf32>
    %cst_58 = arith.constant dense<0.000000e+00> : vector<128xf32>
    %128 = vector.multi_reduction <add>, %127, %cst_58 [1] : vector<128x128xf32> to vector<128xf32>
    %129 = vector.shape_cast %128 : vector<128xf32> to vector<128x1xf32>
    %cst_59 = arith.constant 3.125000e-02 : f32
    %130 = vector.broadcast %cst_59 : f32 to vector<128x1xf32>
    %131 = arith.mulf %129, %130 : vector<128x1xf32>
    %cst_60 = arith.constant 9.99999974E-6 : f32
    %132 = vector.broadcast %cst_60 : f32 to vector<128x1xf32>
    %133 = arith.addf %131, %132 : vector<128x1xf32>
    %134 = math.rsqrt %133 : vector<128x1xf32>
    %135 = vector.broadcast %134 : vector<128x1xf32> to vector<128x128xf32>
    %136 = arith.mulf %126, %135 : vector<128x128xf32>
    %137 = vector.broadcast %112 : vector<1x128xf32> to vector<128x128xf32>
    %138 = arith.mulf %136, %137 : vector<128x128xf32>
    %139 = vector.broadcast %113 : vector<1x128xf32> to vector<128x128xf32>
    %140 = arith.addf %138, %139 : vector<128x128xf32>
    %141 = arith.addf %140, %4 : vector<128x128xf32>
    %c3 = arith.constant 3 : index
    %c0_61 = arith.constant 0 : index
    %142 = vector.load %arg9[%c3, %c0_61] : memref<4x128xf32, #tpu.memory_space<vmem>>, vector<1x128xf32>
    %143 = vector.broadcast %142 : vector<1x128xf32> to vector<128x128xf32>
    %144 = arith.addf %141, %143 : vector<128x128xf32>
    %145 = math.tanh %144 : vector<128x128xf32>
    %c0_62 = arith.constant 0 : index
    %c0_63 = arith.constant 0 : index
    %146 = vector.load %arg10[%c0_62, %c0_63] : memref<128x128xf32, #tpu.memory_space<vmem>>, vector<128x128xf32>
    tpu.vector_store %arg10[%c0_62, %c0_63], %145 {strides = array<i32>} : memref<128x128xf32, #tpu.memory_space<vmem>>, vector<128x128xf32>,
    return
  }
  func.func @transform_0(%arg0: i32) -> (i32, i32) {
    %c0_i32 = arith.constant 0 : i32
    %c0_i32_0 = arith.constant 0 : i32
    return %arg0, %c0_i32 : i32, i32
  }
  func.func @transform_1(%arg0: i32) -> (i32, i32) {
    %c0_i32 = arith.constant 0 : i32
    %c0_i32_0 = arith.constant 0 : i32
    %c0_i32_1 = arith.constant 0 : i32
    return %c0_i32, %c0_i32_0 : i32, i32
  }
  func.func @transform_2(%arg0: i32) -> (i32, i32) {
    %c0_i32 = arith.constant 0 : i32
    %c0_i32_0 = arith.constant 0 : i32
    %c0_i32_1 = arith.constant 0 : i32
    return %c0_i32, %c0_i32_0 : i32, i32
  }
  func.func @transform_3(%arg0: i32) -> (i32, i32) {
    %c0_i32 = arith.constant 0 : i32
    %c0_i32_0 = arith.constant 0 : i32
    %c0_i32_1 = arith.constant 0 : i32
    return %c0_i32, %c0_i32_0 : i32, i32
  }
  func.func @transform_4(%arg0: i32) -> (i32, i32) {
    %c0_i32 = arith.constant 0 : i32
    %c0_i32_0 = arith.constant 0 : i32
    %c0_i32_1 = arith.constant 0 : i32
    return %c0_i32, %c0_i32_0 : i32, i32
  }
  func.func @transform_5(%arg0: i32) -> (i32, i32) {
    %c0_i32 = arith.constant 0 : i32
    %c0_i32_0 = arith.constant 0 : i32
    %c0_i32_1 = arith.constant 0 : i32
    return %c0_i32, %c0_i32_0 : i32, i32
  }
  func.func @transform_6(%arg0: i32) -> (i32, i32) {
    %c0_i32 = arith.constant 0 : i32
    %c0_i32_0 = arith.constant 0 : i32
    %c0_i32_1 = arith.constant 0 : i32
    return %c0_i32, %c0_i32_0 : i32, i32
  }
  func.func @transform_7(%arg0: i32) -> (i32, i32) {
    %c0_i32 = arith.constant 0 : i32
    %c0_i32_0 = arith.constant 0 : i32
    %c0_i32_1 = arith.constant 0 : i32
    return %c0_i32, %c0_i32_0 : i32, i32
  }
  func.func @transform_8(%arg0: i32) -> (i32, i32) {
    %c0_i32 = arith.constant 0 : i32
    %c0_i32_0 = arith.constant 0 : i32
    %c0_i32_1 = arith.constant 0 : i32
    return %c0_i32, %c0_i32_0 : i32, i32
  }
  func.func @transform_9(%arg0: i32) -> (i32, i32) {
    %c0_i32 = arith.constant 0 : i32
    %c0_i32_0 = arith.constant 0 : i32
    return %arg0, %c0_i32 : i32, i32
  }
}

</mosaic_0001>

<bundles_post_ra>
// kernel: tpu_custom_call.1
= control target key start
LH: loop header
LB: loop body
LE: loop exit
PB: predicated region body
PF: predicated region fallthrough
CT: control target
= control target key end

     0   :  { %14 = vsyncpa [#allocation3], 0  ;;  %s3598_s0 = inlined_call_operand.hbm [shape: bf16[128,128], index: 0, kind: input, shape index: {}]   ;;  %s3599_s1 = inlined_call_operand.hbm [shape: bf16[128,256], index: 1, kind: input, shape index: {}]   ;;  %s3600_s2 = inlined_call_operand.vmem [shape: f32[3,128], index: 2, kind: input, shape index: {}]   ;;  %s3601_s3 = inlined_call_operand.hbm [shape: bf16[128,128], index: 3, kind: input, shape index: {}]   ;;  %s3602_s4 = inlined_call_operand.vmem [shape: f32[3,128], index: 4, kind: input, shape index: {}]   ;;  %s3603_s5 = inlined_call_operand.hbm [shape: bf16[128,128], index: 5, kind: input, shape index: {}]   ;;  %s3604_s6 = inlined_call_operand.vmem [shape: f32[3,128], index: 6, kind: input, shape index: {}]   ;;  %s3605_s7 = inlined_call_operand.hbm [shape: bf16[128,128], index: 7, kind: input, shape index: {}]   ;;  %s3606_s8 = inlined_call_operand.vmem [shape: f32[4,128], index: 8, kind: input, shape index: {}]   ;;  %s3607_s9 = inlined_call_operand.hbm [shape: f32[128,128], index: 9, kind: output, shape index: {}]  }
   0x1   :  { %15 = vsyncpa [#allocation6], 0 }
   0x2   :  { %16 = vsyncpa [#allocation9], 0 }
   0x3   :  { %17 = vsyncpa [#allocation4], 0  ;;  %s2570_s30 = smov [#allocation5]   ;;  %s2430_s13 = scalar_lea.hbm %s3599_s1, 2048 }
   0x4   :  { %s35_s10 = sshll.u32 %s2570_s30, 4  ;;  %p2431_p0 = scmp.ne.s32.totalorder %s3599_s1, %s2430_s13  ;;  %s36_s10 = int_to_ptr.vmem [resolvable:$true] %s35_s10 }
   0x5   :  { %p2434_p1 = scmp.lt.u32.totalorder %s2430_s13, %s3599_s1 }
   0x7   :  { %p2436_p2 = pnand %p2434_p1, %p2431_p0 }
   0x9   :  { %2439 = shalt.err (!%p2436_p2)
}
   0xa   :  { %s2440_s18 = scalar_lea.vmem %s36_s10, 2048  ;;  %p2445_p4 = scmp.lt.s32.totalorder %s36_s10, %s36_s10 }
   0xb   :  { %p2441_p3 = scmp.ne.s32.totalorder %s36_s10, %s2440_s18  ;;  %p2446_p5 = scmp.lt.s32.totalorder %s2440_s18, %s2440_s18 }
   0xd   :  { %p2447_p6 = por %p2446_p5, %p2445_p4 }
   0xf   :  { %p2448_p7 = pnand %p2447_p6, %p2441_p3 }
  0x11   :  { %2451 = shalt.err (!%p2448_p7)
}
  0x12   :  { %s2571_s19 = smov 128   ;;  %s2572_s20 = smov 8  }
  0x13   :  { %41 = dma.hbm_to_vmem [thread:$0]  %s3599_s1, 2048, %s36_s10, [#allocation6], %s2571_s19, %s2571_s19, %s2572_s20  }
  0x14   :  { %s2573_s23 = smov [#allocation8]   ;;  %s2574_s25 = smov [#allocation2]  }
  0x15   :  { %s63_s24 = sshll.u32 %s2573_s23, 4  ;;  %s23_s26 = sshll.u32 %s2574_s25, 4  ;;  %s64_s24 = int_to_ptr.vmem [resolvable:$true] %s63_s24  ;;  %s24_s26 = int_to_ptr.vmem [resolvable:$true] %s23_s26 }
  0x16   :  { %s2452_s29 = scalar_lea.hbm %s3603_s5, 1024 }
  0x17   :  { %p2453_p8 = scmp.ne.s32.totalorder %s3603_s5, %s2452_s29  ;;  %p2456_p9 = scmp.lt.u32.totalorder %s2452_s29, %s3603_s5 }
  0x19   :  { %p2458_p10 = pnand %p2456_p9, %p2453_p8 }
  0x1b   :  { %2461 = shalt.err (!%p2458_p10)
}
  0x1c   :  { %s2462_s1 = scalar_lea.vmem %s64_s24, 1024  ;;  %p2467_p12 = scmp.lt.s32.totalorder %s64_s24, %s64_s24 }
  0x1d   :  { %p2463_p11 = scmp.ne.s32.totalorder %s64_s24, %s2462_s1  ;;  %p2468_p13 = scmp.lt.s32.totalorder %s2462_s1, %s2462_s1 }
  0x1f   :  { %p2469_p0 = por %p2468_p13, %p2467_p12 }
  0x21   :  { %p2470_p1 = pnand %p2469_p0, %p2463_p11 }
  0x23   :  { %2473 = shalt.err (!%p2470_p1)
}
  0x24   :  { %s2575_s10 = smov 64   ;;  %s2576_s14 = smov 4  }
  0x25   :  { %69 = dma.hbm_to_vmem [thread:$0]  %s3603_s5, 1024, %s64_s24, [#allocation9], %s2575_s10, %s2575_s10, %s2576_s14  }
  0x26   :  { %s2474_s21 = scalar_lea.hbm %s3598_s0, 1024 }
  0x27   :  { %p2475_p2 = scmp.ne.s32.totalorder %s3598_s0, %s2474_s21  ;;  %p2478_p3 = scmp.lt.u32.totalorder %s2474_s21, %s3598_s0 }
  0x29   :  { %p2480_p4 = pnand %p2478_p3, %p2475_p2 }
  0x2b   :  { %2483 = shalt.err (!%p2480_p4)
}
  0x2c   :  { %s2484_s28 = scalar_lea.vmem %s24_s26, 1024  ;;  %p2489_p6 = scmp.lt.s32.totalorder %s24_s26, %s24_s26 }
  0x2d   :  { %p2485_p5 = scmp.ne.s32.totalorder %s24_s26, %s2484_s28  ;;  %p2490_p7 = scmp.lt.s32.totalorder %s2484_s28, %s2484_s28 }
  0x2f   :  { %p2491_p8 = por %p2490_p7, %p2489_p6 }
  0x31   :  { %p2492_p9 = pnand %p2491_p8, %p2485_p5 }
  0x33   :  { %2495 = shalt.err (!%p2492_p9)
}
  0x34   :  { %29 = dma.hbm_to_vmem [thread:$0]  %s3598_s0, 1024, %s24_s26, [#allocation3], %s2575_s10, %s2575_s10, %s2576_s14  }
  0x35   :  { %s2577_s29 = smov [#allocation7]   ;;  %s2578_s11 = smov [#allocation10]  }
  0x36   :  { %s49_s30 = sshll.u32 %s2577_s29, 4  ;;  %s77_s12 = sshll.u32 %s2578_s11, 4  ;;  %s50_s30 = int_to_ptr.vmem [resolvable:$true] %s49_s30  ;;  %s78_s12 = int_to_ptr.vmem [resolvable:$true] %s77_s12 }
  0x37   :  { %s2496_s15 = scalar_lea.hbm %s3601_s3, 1024 }
  0x38   :  { %p2497_p10 = scmp.ne.s32.totalorder %s3601_s3, %s2496_s15  ;;  %p2500_p11 = scmp.lt.u32.totalorder %s2496_s15, %s3601_s3 }
  0x3a   :  { %p2502_p12 = pnand %p2500_p11, %p2497_p10 }
  0x3c   :  { %2505 = shalt.err (!%p2502_p12)
}
  0x3d   :  { %s2506_s0 = scalar_lea.vmem %s50_s30, 1024  ;;  %p2511_p0 = scmp.lt.s32.totalorder %s50_s30, %s50_s30 }
  0x3e   :  { %p2507_p13 = scmp.ne.s32.totalorder %s50_s30, %s2506_s0  ;;  %p2512_p1 = scmp.lt.s32.totalorder %s2506_s0, %s2506_s0 }
  0x40   :  { %p2513_p2 = por %p2512_p1, %p2511_p0 }
  0x42   :  { %p2514_p3 = pnand %p2513_p2, %p2507_p13 }
  0x44   :  { %2517 = shalt.err (!%p2514_p3)
}
  0x45   :  { %55 = dma.hbm_to_vmem [thread:$0]  %s3601_s3, 1024, %s50_s30, [#allocation6], %s2575_s10, %s2575_s10, %s2576_s14  }
  0x46   :  { %s2518_s27 = scalar_lea.hbm %s3605_s7, 1024 }
  0x47   :  { %p2519_p4 = scmp.ne.s32.totalorder %s3605_s7, %s2518_s27  ;;  %p2522_p5 = scmp.lt.u32.totalorder %s2518_s27, %s3605_s7 }
  0x49   :  { %p2524_p6 = pnand %p2522_p5, %p2519_p4 }
  0x4b   :  { %2527 = shalt.err (!%p2524_p6)
}
  0x4c   :  { %s2528_s11 = scalar_lea.vmem %s78_s12, 1024  ;;  %p2533_p8 = scmp.lt.s32.totalorder %s78_s12, %s78_s12 }
  0x4d   :  { %p2529_p7 = scmp.ne.s32.totalorder %s78_s12, %s2528_s11  ;;  %p2534_p9 = scmp.lt.s32.totalorder %s2528_s11, %s2528_s11 }
  0x4f   :  { %p2535_p10 = por %p2534_p9, %p2533_p8 }
  0x51   :  { %p2536_p11 = pnand %p2535_p10, %p2529_p7 }
  0x53   :  { %2539 = shalt.err (!%p2536_p11)
}
  0x54   :  { %83 = dma.hbm_to_vmem [thread:$0]  %s3605_s7, 1024, %s78_s12, [#allocation9], %s2575_s10, %s2575_s10, %s2576_s14  }
  0x55   :  { %2562 = dma.done.wait [#allocation3], 1024  }
  0x56   :  { %2563 = vsyncadd [#allocation3], 4294966272 }
  0x57   :  { %2564 = dma.done.wait [#allocation6], 3072  }
  0x58   :  { %2565 = vsyncadd [#allocation6], 4294964224 }
  0x59   :  { %2566 = dma.done.wait [#allocation9], 2048  }
  0x5a   :  { %2567 = vsyncadd [#allocation9], 4294965248  ;;  %v2579_v0 = vmov 0   ;;  %v2214_v1 = vld [vmem:[#allocation5 + $0x4] ss:$8 sps:$4 sm:$0xff]   ;;  %v2240_v19 = vld [vmem:[#allocation2 + $0x10] sm:$0xff]  }
  0x5b   :  { %294 = vmatprep.mubr.bf16.mxu0 %v2579_v0  ;;  %v2216_v2 = vld [vmem:[#allocation5] ss:$8 sps:$4 sm:$0xff]   ;;  %262 = vmatprep.subr.bf16.mxu0 %v2214_v1  ;;  %v2217_v3 = vld [vmem:[#allocation5 + $0x14] ss:$8 sps:$4 sm:$0xff]   ;;  %v2219_v4 = vld [vmem:[#allocation5 + $0x10] ss:$8 sps:$4 sm:$0xff]  }
  0x5c   :  { %263 = vmatpush1.bf16.msra.mxu0 %v2216_v2  ;;  %v2220_v5 = vld [vmem:[#allocation5 + $0x24] ss:$8 sps:$4 sm:$0xff]   ;;  %v2222_v6 = vld [vmem:[#allocation5 + $0x20] ss:$8 sps:$4 sm:$0xff]   ;;  %v2223_v7 = vld [vmem:[#allocation5 + $0x34] ss:$8 sps:$4 sm:$0xff]  }
  0x5d   :  { %264 = vmatprep.subr.bf16.mxu0 %v2217_v3  ;;  %v2225_v8 = vld [vmem:[#allocation5 + $0x30] ss:$8 sps:$4 sm:$0xff]   ;;  %v2226_v9 = vld [vmem:[#allocation5 + $0x44] ss:$8 sps:$4 sm:$0xff]   ;;  %v2228_v10 = vld [vmem:[#allocation5 + $0x40] ss:$8 sps:$4 sm:$0xff]  }
  0x5e   :  { %v2229_v11 = vld [vmem:[#allocation5 + $0x54] ss:$8 sps:$4 sm:$0xff]   ;;  %v2231_v12 = vld [vmem:[#allocation5 + $0x50] ss:$8 sps:$4 sm:$0xff]   ;;  %v2232_v13 = vld [vmem:[#allocation5 + $0x64] ss:$8 sps:$4 sm:$0xff]  }
  0x5f   :  { %v2234_v14 = vld [vmem:[#allocation5 + $0x60] ss:$8 sps:$4 sm:$0xff]   ;;  %v2235_v15 = vld [vmem:[#allocation5 + $0x74] ss:$8 sps:$4 sm:$0xff]   ;;  %v2237_v16 = vld [vmem:[#allocation5 + $0x70] ss:$8 sps:$4 sm:$0xff]  }
  0x60   :  { %265 = vmatpush1.bf16.msra.mxu0 %v2219_v4  ;;  %v2238_v17 = vld [vmem:[#allocation2] sm:$0xff]   ;;  %v2239_v18 = vld [vmem:[#allocation2 + $0x8] sm:$0xff]   ;;  %v2241_v20 = vld [vmem:[#allocation2 + $0x18] sm:$0xff]  }
  0x61   :  { %266 = vmatprep.subr.bf16.mxu0 %v2220_v5  ;;  %v2242_v21 = vld [vmem:[#allocation2 + $0x20] sm:$0xff]   ;;  %v2243_v22 = vld [vmem:[#allocation2 + $0x28] sm:$0xff]   ;;  %v2244_v23 = vld [vmem:[#allocation2 + $0x30] sm:$0xff]  }
  0x62   :  { %v2245_v24 = vld [vmem:[#allocation2 + $0x38] sm:$0xff]   ;;  %v2006_v25 = vld [vmem:[%s3600_s2] ss:$0 sm:$0xff] }
  0x64   :  { %267 = vmatpush1.bf16.msra.mxu0 %v2222_v6 }
  0x65   :  { %268 = vmatprep.subr.bf16.mxu0 %v2223_v7 }
  0x68   :  { %269 = vmatpush1.bf16.msra.mxu0 %v2225_v8 }
  0x69   :  { %270 = vmatprep.subr.bf16.mxu0 %v2226_v9 }
  0x6c   :  { %271 = vmatpush1.bf16.msra.mxu0 %v2228_v10  ;;  %v462_v10 = vlaneseq }
  0x6d   :  { %272 = vmatprep.subr.bf16.mxu0 %v2229_v11 }
  0x6e   :  { %v2789_v11 = vand.u32 127, %v462_v10 }
  0x70   :  { %273 = vmatpush1.bf16.msra.mxu0 %v2231_v12  ;;  %vm464_vm0 = vcmp.lt.s32.totalorder %v2789_v11, 64  ;;  %vm1723_vm1 = vcmp.lt.s32.totalorder %v2789_v11, 32 }
  0x71   :  { %274 = vmatprep.subr.bf16.mxu0 %v2232_v13 }
  0x74   :  { %275 = vmatpush1.bf16.msra.mxu0 %v2234_v14 }
  0x75   :  { %276 = vmatprep.subr.bf16.mxu0 %v2235_v15 }
  0x78   :  { %277 = vmatpush1.bf16.msra.mxu0 %v2237_v16 }
  0x7b   :  { %295 = vmatmul.mubr.bf16.vlgmr.msra.gmra.mrb[0].mxu0 %v2238_v17 }
  0x7c   :  { %304 = vmatprep.mubr.bf16.mxu0 %v2579_v0 }
  0x83   :  { %305 = vmatmul.mubr.bf16.gmra.mrb[4].mxu0 %v2239_v18 }
  0x84   :  { %314 = vmatprep.mubr.bf16.mxu0 %v2579_v0 }
  0x8b   :  { %315 = vmatmul.mubr.bf16.gmra.mrb[8].mxu0 %v2240_v19 }
  0x8c   :  { %324 = vmatprep.mubr.bf16.mxu0 %v2579_v0 }
  0x93   :  { %325 = vmatmul.mubr.bf16.gmra.mrb[12].mxu0 %v2241_v20 }
  0x94   :  { %334 = vmatprep.mubr.bf16.mxu0 %v2579_v0 }
  0x9b   :  { %335 = vmatmul.mubr.bf16.gmra.mrb[16].mxu0 %v2242_v21 }
  0x9c   :  { %344 = vmatprep.mubr.bf16.mxu0 %v2579_v0 }
  0xa3   :  { %345 = vmatmul.mubr.bf16.gmra.mrb[20].mxu0 %v2243_v22 }
  0xa4   :  { %354 = vmatprep.mubr.bf16.mxu0 %v2579_v0 }
  0xab   :  { %355 = vmatmul.mubr.bf16.gmra.mrb[24].mxu0 %v2244_v23 }
  0xac   :  { %364 = vmatprep.mubr.bf16.mxu0 %v2579_v0 }
  0xb3   :  { %365 = vmatmul.mubr.bf16.gmra.mrb[28].mxu0 %v2245_v24 }
 0x14e   :  { %v296_v26 = vpop.f32.mrb[0].mxu0 }
 0x14f   :  { %v2709_v27 = vadd.f32 %v2006_v25, %v296_v26  ;;  %v2711_v28 = vpop.f32.mrb[1].mxu0 }
 0x150   :  { %v300_v29 = vpop.f32.mrb[2].mxu0 }
 0x151   :  { %398 = vadd.xlane.f32.xlu0 %v2709_v27  ;;  %v2714_v30 = vpop.f32.mrb[3].mxu0  ;;  %v2716_v31 = vadd.f32 %v2006_v25, %v300_v29 }
 0x155   :  { %400 = vadd.xlane.f32.xlu0 %v2716_v31 }
 0x156   :  { %v306_v32 = vpop.f32.mrb[4].mxu0 }
 0x157   :  { %v2719_v33 = vadd.f32 %v2006_v25, %v306_v32  ;;  %v2721_v34 = vpop.f32.mrb[5].mxu0 }
 0x158   :  { %v310_v35 = vpop.f32.mrb[6].mxu0 }
 0x159   :  { %402 = vadd.xlane.f32.xlu1 %v2719_v33  ;;  %v2724_v36 = vpop.f32.mrb[7].mxu0  ;;  %v2726_v37 = vadd.f32 %v2006_v25, %v310_v35 }
 0x15d   :  { %404 = vadd.xlane.f32.xlu1 %v2726_v37 }
 0x15e   :  { %v316_v38 = vpop.f32.mrb[8].mxu0 }
 0x15f   :  { %v2729_v39 = vadd.f32 %v2006_v25, %v316_v38  ;;  %v2731_v40 = vpop.f32.mrb[9].mxu0 }
 0x160   :  { %v320_v41 = vpop.f32.mrb[10].mxu0 }
 0x161   :  { %v2733_v42 = vadd.f32 %v2006_v25, %v320_v41  ;;  %406 = vadd.xlane.f32.xlu0 %v2729_v39  ;;  %v2736_v43 = vpop.f32.mrb[11].mxu0 }
 0x163   :  { %408 = vadd.xlane.f32.xlu1 %v2733_v42 }
 0x166   :  { %v326_v44 = vpop.f32.mrb[12].mxu0 }
 0x167   :  { %v2739_v45 = vadd.f32 %v2006_v25, %v326_v44  ;;  %v2741_v46 = vpop.f32.mrb[13].mxu0 }
 0x168   :  { %v330_v47 = vpop.f32.mrb[14].mxu0 }
 0x169   :  { %v2743_v48 = vadd.f32 %v2006_v25, %v330_v47  ;;  %410 = vadd.xlane.f32.xlu0 %v2739_v45  ;;  %v2746_v49 = vpop.f32.mrb[15].mxu0 }
 0x16b   :  { %412 = vadd.xlane.f32.xlu1 %v2743_v48 }
 0x16e   :  { %v336_v50 = vpop.f32.mrb[16].mxu0 }
 0x16f   :  { %v2749_v51 = vadd.f32 %v2006_v25, %v336_v50  ;;  %v2751_v52 = vpop.f32.mrb[17].mxu0 }
 0x170   :  { %v340_v53 = vpop.f32.mrb[18].mxu0 }
 0x171   :  { %v2753_v54 = vadd.f32 %v2006_v25, %v340_v53  ;;  %414 = vadd.xlane.f32.xlu0 %v2749_v51  ;;  %v2756_v55 = vpop.f32.mrb[19].mxu0 }
 0x173   :  { %416 = vadd.xlane.f32.xlu1 %v2753_v54 }
 0x176   :  { %v346_v56 = vpop.f32.mrb[20].mxu0 }
 0x177   :  { %v2759_v57 = vadd.f32 %v2006_v25, %v346_v56  ;;  %v2761_v58 = vpop.f32.mrb[21].mxu0 }
 0x178   :  { %v350_v59 = vpop.f32.mrb[22].mxu0 }
 0x179   :  { %v2763_v60 = vadd.f32 %v2006_v25, %v350_v59  ;;  %418 = vadd.xlane.f32.xlu0 %v2759_v57  ;;  %v2766_v61 = vpop.f32.mrb[23].mxu0 }
 0x17b   :  { %420 = vadd.xlane.f32.xlu1 %v2763_v60 }
 0x17e   :  { %v356_v62 = vpop.f32.mrb[24].mxu0 }
 0x17f   :  { %v2769_v63 = vadd.f32 %v2006_v25, %v356_v62  ;;  %v2771_v0 = vpop.f32.mrb[25].mxu0 }
 0x180   :  { %v360_v1 = vpop.f32.mrb[26].mxu0 }
 0x181   :  { %v2773_v2 = vadd.f32 %v2006_v25, %v360_v1  ;;  %422 = vadd.xlane.f32.xlu0 %v2769_v63  ;;  %v2776_v3 = vpop.f32.mrb[27].mxu0  ;;  %v2246_v1 = vld [vmem:[#allocation7] sm:$0xff]  }
 0x182   :  { %2091 = vmatprep.subr.bf16.mxu1 %v2246_v1 }
 0x183   :  { %424 = vadd.xlane.f32.xlu1 %v2773_v2  ;;  %2092 = vmatpush3.bf16.msra.mxu1 %v2246_v1 }
 0x186   :  { %v366_v4 = vpop.f32.mrb[28].mxu0 }
 0x187   :  { %v2779_v5 = vadd.f32 %v2006_v25, %v366_v4  ;;  %v2781_v6 = vpop.f32.mrb[29].mxu0 }
 0x188   :  { %v370_v7 = vpop.f32.mrb[30].mxu0 }
 0x189   :  { %v2783_v8 = vadd.f32 %v2006_v25, %v370_v7  ;;  %426 = vadd.xlane.f32.xlu0 %v2779_v5  ;;  %v2786_v9 = vpop.f32.mrb[31].mxu0 }
 0x18b   :  { %428 = vadd.xlane.f32.xlu1 %v2783_v8 }
 0x1de   :  { %v399_v12 = vpop.xlane.xlu0 %398 }
 0x1df   :  { %v430_v13 = vmul.f32 0.015625, %v399_v12 }
 0x1e1   :  { %v446_v14 = vsub.f32 %v2709_v27, %v430_v13  ;;  %v2247_v13 = vld [vmem:[#allocation7 + $0x8] sm:$0xff]  }
 0x1e2   :  { %v401_v15 = vpop.xlane.xlu0 %400  ;;  %2093 = vmatprep.subr.bf16.mxu1 %v2247_v13 }
 0x1e3   :  { %v431_v16 = vmul.f32 0.015625, %v401_v15  ;;  %v2795_v17 = vsel %vm464_vm0, %v446_v14, 0.0  ;;  %2094 = vmatpush3.bf16.msra.mxu1 %v2247_v13  ;;  %v2253_v13 = vld [vmem:[#allocation7 + $0x38] sm:$0xff]  }
 0x1e4   :  { %v483_v18 = vmul.f32 %v2795_v17, %v2795_v17 }
 0x1e5   :  { %v447_v19 = vsub.f32 %v2716_v31, %v431_v16 }
 0x1e6   :  { %v403_v20 = vpop.xlane.xlu1 %402  ;;  %499 = vadd.xlane.f32.xlu0 %v483_v18  ;;  %v2248_v18 = vld [vmem:[#allocation7 + $0x10] sm:$0xff]  }
 0x1e7   :  { %v432_v21 = vmul.f32 0.015625, %v403_v20  ;;  %v2802_v22 = vsel %vm464_vm0, %v447_v19, 0.0  ;;  %2095 = vmatprep.subr.bf16.mxu1 %v2248_v18 }
 0x1e8   :  { %v484_v23 = vmul.f32 %v2802_v22, %v2802_v22  ;;  %2096 = vmatpush3.bf16.msra.mxu1 %v2248_v18 }
 0x1e9   :  { %v448_v24 = vsub.f32 %v2719_v33, %v432_v21 }
 0x1ea   :  { %v405_v25 = vpop.xlane.xlu1 %404  ;;  %501 = vadd.xlane.f32.xlu1 %v484_v23 }
 0x1eb   :  { %v433_v26 = vmul.f32 0.015625, %v405_v25  ;;  %v2809_v27 = vsel %vm464_vm0, %v448_v24, 0.0  ;;  %v2249_v25 = vld [vmem:[#allocation7 + $0x18] sm:$0xff]  }
 0x1ec   :  { %v485_v29 = vmul.f32 %v2809_v27, %v2809_v27  ;;  %2097 = vmatprep.subr.bf16.mxu1 %v2249_v25 }
 0x1ed   :  { %v449_v31 = vsub.f32 %v2726_v37, %v433_v26  ;;  %2098 = vmatpush3.bf16.msra.mxu1 %v2249_v25 }
 0x1ee   :  { %v407_v32 = vpop.xlane.xlu0 %406  ;;  %503 = vadd.xlane.f32.xlu0 %v485_v29 }
 0x1ef   :  { %v434_v35 = vmul.f32 0.015625, %v407_v32  ;;  %v2816_v38 = vsel %vm464_vm0, %v449_v31, 0.0  ;;  %v2250_v32 = vld [vmem:[#allocation7 + $0x20] sm:$0xff]  }
 0x1f0   :  { %v409_v33 = vpop.xlane.xlu1 %408  ;;  %v486_v41 = vmul.f32 %v2816_v38, %v2816_v38  ;;  %2099 = vmatprep.subr.bf16.mxu1 %v2250_v32 }
 0x1f1   :  { %v450_v44 = vsub.f32 %v2729_v39, %v434_v35  ;;  %v435_v47 = vmul.f32 0.015625, %v409_v33  ;;  %2100 = vmatpush3.bf16.msra.mxu1 %v2250_v32 }
 0x1f2   :  { %505 = vadd.xlane.f32.xlu1 %v486_v41 }
 0x1f3   :  { %v451_v50 = vsub.f32 %v2733_v42, %v435_v47  ;;  %v2824_v37 = vsel %vm464_vm0, %v450_v44, 0.0 }
 0x1f4   :  { %v487_v53 = vmul.f32 %v2824_v37, %v2824_v37 }
 0x1f5   :  { %v2830_v56 = vsel %vm464_vm0, %v451_v50, 0.0  ;;  %v2251_v50 = vld [vmem:[#allocation7 + $0x28] sm:$0xff]  }
 0x1f6   :  { %v411_v59 = vpop.xlane.xlu0 %410  ;;  %507 = vadd.xlane.f32.xlu0 %v487_v53  ;;  %v488_v39 = vmul.f32 %v2830_v56, %v2830_v56  ;;  %2101 = vmatprep.subr.bf16.mxu1 %v2251_v50 }
 0x1f7   :  { %v436_v62 = vmul.f32 0.015625, %v411_v59  ;;  %2102 = vmatpush3.bf16.msra.mxu1 %v2251_v50 }
 0x1f8   :  { %v413_v4 = vpop.xlane.xlu1 %412  ;;  %509 = vadd.xlane.f32.xlu1 %v488_v39 }
 0x1f9   :  { %v452_v42 = vsub.f32 %v2739_v45, %v436_v62  ;;  %v437_v7 = vmul.f32 0.015625, %v413_v4  ;;  %v2252_v62 = vld [vmem:[#allocation7 + $0x30] sm:$0xff]  }
 0x1fa   :  { %2103 = vmatprep.subr.bf16.mxu1 %v2252_v62 }
 0x1fb   :  { %v453_v10 = vsub.f32 %v2743_v48, %v437_v7  ;;  %v2838_v12 = vsel %vm464_vm0, %v452_v42, 0.0  ;;  %2104 = vmatpush3.bf16.msra.mxu1 %v2252_v62 }
 0x1fc   :  { %v489_v14 = vmul.f32 %v2838_v12, %v2838_v12  ;;  %2105 = vmatprep.subr.bf16.mxu1 %v2253_v13 }
 0x1fd   :  { %v2844_v15 = vsel %vm464_vm0, %v453_v10, 0.0 }
 0x1fe   :  { %v415_v16 = vpop.xlane.xlu0 %414  ;;  %511 = vadd.xlane.f32.xlu0 %v489_v14  ;;  %v490_v45 = vmul.f32 %v2844_v15, %v2844_v15 }
 0x1ff   :  { %v438_v48 = vmul.f32 0.015625, %v415_v16  ;;  %2106 = vmatpush3.bf16.msra.mxu1 %v2253_v13 }
 0x200   :  { %v417_v19 = vpop.xlane.xlu1 %416  ;;  %513 = vadd.xlane.f32.xlu1 %v490_v45 }
 0x201   :  { %v454_v20 = vsub.f32 %v2749_v51, %v438_v48  ;;  %v439_v21 = vmul.f32 0.015625, %v417_v19 }
 0x203   :  { %v455_v23 = vsub.f32 %v2753_v54, %v439_v21  ;;  %v2852_v24 = vsel %vm464_vm0, %v454_v20, 0.0 }
 0x204   :  { %v491_v26 = vmul.f32 %v2852_v24, %v2852_v24 }
 0x205   :  { %v2858_v29 = vsel %vm464_vm0, %v455_v23, 0.0 }
 0x206   :  { %v419_v31 = vpop.xlane.xlu0 %418  ;;  %515 = vadd.xlane.f32.xlu0 %v491_v26  ;;  %v492_v51 = vmul.f32 %v2858_v29, %v2858_v29 }
 0x207   :  { %v440_v54 = vmul.f32 0.015625, %v419_v31 }
 0x208   :  { %v421_v35 = vpop.xlane.xlu1 %420  ;;  %517 = vadd.xlane.f32.xlu1 %v492_v51 }
 0x209   :  { %v456_v33 = vsub.f32 %v2759_v57, %v440_v54  ;;  %v441_v41 = vmul.f32 0.015625, %v421_v35 }
 0x20b   :  { %v457_v44 = vsub.f32 %v2763_v60, %v441_v41  ;;  %v2866_v47 = vsel %vm464_vm0, %v456_v33, 0.0 }
 0x20c   :  { %v493_v53 = vmul.f32 %v2866_v47, %v2866_v47 }
 0x20d   :  { %v2872_v59 = vsel %vm464_vm0, %v457_v44, 0.0 }
 0x20e   :  { %v423_v39 = vpop.xlane.xlu0 %422  ;;  %519 = vadd.xlane.f32.xlu0 %v493_v53  ;;  %v494_v57 = vmul.f32 %v2872_v59, %v2872_v59 }
 0x20f   :  { %v442_v60 = vmul.f32 0.015625, %v423_v39 }
 0x210   :  { %v425_v1 = vpop.xlane.xlu1 %424  ;;  %521 = vadd.xlane.f32.xlu1 %v494_v57  ;;  %v2907_v57 = vld [vmem:[%s3600_s2 + $0x1] ss:$0 sm:$0xff] }
 0x211   :  { %v458_v4 = vsub.f32 %v2769_v63, %v442_v60  ;;  %v443_v42 = vmul.f32 0.015625, %v425_v1 }
 0x213   :  { %v459_v7 = vsub.f32 %v2773_v2, %v443_v42  ;;  %v2880_v10 = vsel %vm464_vm0, %v458_v4, 0.0 }
 0x214   :  { %v495_v14 = vmul.f32 %v2880_v10, %v2880_v10 }
 0x215   :  { %v2886_v16 = vsel %vm464_vm0, %v459_v7, 0.0 }
 0x216   :  { %523 = vadd.xlane.f32.xlu0 %v495_v14  ;;  %v427_v63 = vpop.xlane.xlu0 %426  ;;  %v496_v45 = vmul.f32 %v2886_v16, %v2886_v16 }
 0x217   :  { %v444_v2 = vmul.f32 0.015625, %v427_v63  ;;  %v2914_v63 = vld [vmem:[%s3600_s2 + $0x2] ss:$0 sm:$0xff] }
 0x218   :  { %525 = vadd.xlane.f32.xlu1 %v496_v45  ;;  %v429_v48 = vpop.xlane.xlu1 %428 }
 0x219   :  { %v460_v18 = vsub.f32 %v2779_v5, %v444_v2  ;;  %v445_v19 = vmul.f32 0.015625, %v429_v48 }
 0x21b   :  { %v461_v20 = vsub.f32 %v2783_v8, %v445_v19  ;;  %v2894_v21 = vsel %vm464_vm0, %v460_v18, 0.0 }
 0x21c   :  { %v497_v23 = vmul.f32 %v2894_v21, %v2894_v21 }
 0x21d   :  { %v2900_v25 = vsel %vm464_vm0, %v461_v20, 0.0 }
 0x21e   :  { %527 = vadd.xlane.f32.xlu0 %v497_v23  ;;  %v498_v26 = vmul.f32 %v2900_v25, %v2900_v25 }
 0x220   :  { %529 = vadd.xlane.f32.xlu1 %v498_v26 }
 0x273   :  { %v500_v5 = vpop.xlane.xlu0 %499 }
 0x274   :  { %v531_v31 = vmul.f32 0.015625, %v500_v5 }
 0x276   :  { %v547_v51 = vadd.f32 1e-05, %v531_v31 }
 0x277   :  { %v502_v8 = vpop.xlane.xlu1 %501 }
 0x278   :  { %2270 = vrsqrt.f32 %v547_v51  ;;  %v532_v54 = vmul.f32 0.015625, %v502_v8 }
 0x27a   :  { %v548_v32 = vadd.f32 1e-05, %v532_v54 }
 0x27b   :  { %v504_v35 = vpop.xlane.xlu0 %503 }
 0x27c   :  { %2272 = vrsqrt.f32 %v548_v32  ;;  %v533_v33 = vmul.f32 0.015625, %v504_v35 }
 0x27e   :  { %v549_v41 = vadd.f32 1e-05, %v533_v33 }
 0x27f   :  { %v506_v44 = vpop.xlane.xlu1 %505 }
 0x280   :  { %2274 = vrsqrt.f32 %v549_v41  ;;  %v534_v50 = vmul.f32 0.015625, %v506_v44 }
 0x282   :  { %v2271_v53 = vpop.eup %2270  ;;  %v550_v39 = vadd.f32 1e-05, %v534_v50 }
 0x283   :  { %v508_v60 = vpop.xlane.xlu0 %507  ;;  %v579_v62 = vmul.f32 %v2271_v53, %v2795_v17 }
 0x284   :  { %2276 = vrsqrt.f32 %v550_v39  ;;  %v535_v1 = vmul.f32 0.015625, %v508_v60 }
 0x285   :  { %v510_v4 = vpop.xlane.xlu1 %509  ;;  %v599_v42 = vmul.f32 %v2907_v57, %v579_v62 }
 0x286   :  { %v2273_v7 = vpop.eup %2272  ;;  %v551_v13 = vadd.f32 1e-05, %v535_v1  ;;  %v536_v14 = vmul.f32 0.015625, %v510_v4 }
 0x287   :  { %v580_v45 = vmul.f32 %v2273_v7, %v2802_v22  ;;  %v619_v17 = vadd.f32 %v2914_v63, %v599_v42 }
 0x288   :  { %2278 = vrsqrt.f32 %v551_v13  ;;  %v552_v2 = vadd.f32 1e-05, %v536_v14 }
 0x289   :  { %v600_v48 = vmul.f32 %v2907_v57, %v580_v45  ;;  %v635_v31 = vmax.f32 %v619_v17, 0.0 }
 0x28a   :  { %v2275_v18 = vpop.eup %2274  ;;  %2280 = vrsqrt.f32 %v552_v2 }
 0x28b   :  { %v512_v19 = vpop.xlane.xlu0 %511  ;;  %v620_v20 = vadd.f32 %v2914_v63, %v600_v48  ;;  %v581_v23 = vmul.f32 %v2275_v18, %v2809_v27 }
 0x28c   :  { %v537_v26 = vmul.f32 0.015625, %v512_v19 }
 0x28d   :  { %v514_v5 = vpop.xlane.xlu1 %513  ;;  %v636_v51 = vmax.f32 %v620_v20, 0.0  ;;  %v601_v8 = vmul.f32 %v2907_v57, %v581_v23 }
 0x28e   :  { %v2277_v22 = vpop.eup %2276  ;;  %v553_v54 = vadd.f32 1e-05, %v537_v26  ;;  %v538_v32 = vmul.f32 0.015625, %v514_v5 }
 0x28f   :  { %v651_v35 = vpack.c.bf16 %v636_v51, %v635_v31  ;;  %v582_v33 = vmul.f32 %v2277_v22, %v2816_v38  ;;  %v621_v50 = vadd.f32 %v2914_v63, %v601_v8 }
 0x290   :  { %2282 = vrsqrt.f32 %v553_v54  ;;  %v554_v41 = vadd.f32 1e-05, %v538_v32 }
 0x291   :  { %2107 = vmatprep.mubr.bf16.mxu1 %v651_v35  ;;  %v602_v44 = vmul.f32 %v2907_v57, %v582_v33  ;;  %v637_v42 = vmax.f32 %v621_v50, 0.0 }
 0x292   :  { %v2279_v27 = vpop.eup %2278  ;;  %2284 = vrsqrt.f32 %v554_v41 }
 0x293   :  { %v516_v53 = vpop.xlane.xlu0 %515  ;;  %v622_v39 = vadd.f32 %v2914_v63, %v602_v44  ;;  %v583_v60 = vmul.f32 %v2279_v27, %v2824_v37 }
 0x294   :  { %v2281_v62 = vpop.eup %2280  ;;  %v539_v1 = vmul.f32 0.015625, %v516_v53 }
 0x295   :  { %v518_v4 = vpop.xlane.xlu1 %517  ;;  %v638_v7 = vmax.f32 %v622_v39, 0.0  ;;  %v584_v38 = vmul.f32 %v2281_v62, %v2830_v56  ;;  %v603_v13 = vmul.f32 %v2907_v57, %v583_v60 }
 0x296   :  { %v555_v14 = vadd.f32 1e-05, %v539_v1  ;;  %v540_v45 = vmul.f32 0.015625, %v518_v4 }
 0x297   :  { %v652_v2 = vpack.c.bf16 %v638_v7, %v637_v42  ;;  %v604_v48 = vmul.f32 %v2907_v57, %v584_v38  ;;  %v623_v17 = vadd.f32 %v2914_v63, %v603_v13 }
 0x298   :  { %2286 = vrsqrt.f32 %v555_v14  ;;  %v556_v18 = vadd.f32 1e-05, %v540_v45 }
 0x299   :  { %2108 = vmatmul.mubr.bf16.vlgmr.msra.gmra.mrb[0].mxu1 %v652_v2  ;;  %v624_v37 = vadd.f32 %v2914_v63, %v604_v48  ;;  %v639_v23 = vmax.f32 %v623_v17, 0.0 }
 0x29a   :  { %v2283_v19 = vpop.eup %2282  ;;  %2288 = vrsqrt.f32 %v556_v18 }
 0x29b   :  { %v520_v20 = vpop.xlane.xlu0 %519  ;;  %v640_v26 = vmax.f32 %v624_v37, 0.0  ;;  %v585_v56 = vmul.f32 %v2283_v19, %v2838_v12 }
 0x29c   :  { %v2285_v5 = vpop.eup %2284  ;;  %v541_v31 = vmul.f32 0.015625, %v520_v20 }
 0x29d   :  { %v522_v51 = vpop.xlane.xlu1 %521  ;;  %v653_v8 = vpack.c.bf16 %v640_v26, %v639_v23  ;;  %v586_v22 = vmul.f32 %v2285_v5, %v2844_v15  ;;  %v605_v54 = vmul.f32 %v2907_v57, %v585_v56 }
 0x29e   :  { %v557_v32 = vadd.f32 1e-05, %v541_v31  ;;  %v542_v35 = vmul.f32 0.015625, %v522_v51 }
 0x29f   :  { %2111 = vmatprep.mubr.bf16.mxu1 %v653_v8  ;;  %v606_v33 = vmul.f32 %v2907_v57, %v586_v22  ;;  %v625_v41 = vadd.f32 %v2914_v63, %v605_v54 }
 0x2a0   :  { %2290 = vrsqrt.f32 %v557_v32  ;;  %v558_v44 = vadd.f32 1e-05, %v542_v35 }
 0x2a1   :  { %v626_v50 = vadd.f32 %v2914_v63, %v606_v33  ;;  %v641_v53 = vmax.f32 %v625_v41, 0.0 }
 0x2a2   :  { %v2287_v12 = vpop.eup %2286  ;;  %2292 = vrsqrt.f32 %v558_v44 }
 0x2a3   :  { %v524_v27 = vpop.xlane.xlu0 %523  ;;  %v642_v39 = vmax.f32 %v626_v50, 0.0  ;;  %v587_v15 = vmul.f32 %v2287_v12, %v2852_v24 }
 0x2a4   :  { %v2289_v60 = vpop.eup %2288  ;;  %v543_v62 = vmul.f32 0.015625, %v524_v27 }
 0x2a5   :  { %v526_v1 = vpop.xlane.xlu1 %525  ;;  %v654_v4 = vpack.c.bf16 %v642_v39, %v641_v53  ;;  %v588_v42 = vmul.f32 %v2289_v60, %v2858_v29  ;;  %v607_v7 = vmul.f32 %v2907_v57, %v587_v15 }
 0x2a6   :  { %v559_v38 = vadd.f32 1e-05, %v543_v62  ;;  %v544_v13 = vmul.f32 0.015625, %v526_v1 }
 0x2a7   :  { %2112 = vmatmul.mubr.bf16.gmra.mrb[4].mxu1 %v654_v4  ;;  %v608_v14 = vmul.f32 %v2907_v57, %v588_v42  ;;  %v627_v45 = vadd.f32 %v2914_v63, %v607_v7 }
 0x2a8   :  { %2294 = vrsqrt.f32 %v559_v38  ;;  %v560_v2 = vadd.f32 1e-05, %v544_v13 }
 0x2a9   :  { %v628_v48 = vadd.f32 %v2914_v63, %v608_v14  ;;  %v643_v18 = vmax.f32 %v627_v45, 0.0 }
 0x2aa   :  { %v2291_v24 = vpop.eup %2290  ;;  %2296 = vrsqrt.f32 %v560_v2 }
 0x2ab   :  { %v528_v17 = vpop.xlane.xlu0 %527  ;;  %v644_v37 = vmax.f32 %v628_v48, 0.0  ;;  %v589_v29 = vmul.f32 %v2291_v24, %v2866_v47 }
 0x2ac   :  { %v2293_v19 = vpop.eup %2292  ;;  %v545_v20 = vmul.f32 0.015625, %v528_v17 }
 0x2ad   :  { %v530_v23 = vpop.xlane.xlu1 %529  ;;  %v655_v26 = vpack.c.bf16 %v644_v37, %v643_v18  ;;  %v590_v56 = vmul.f32 %v2293_v19, %v2872_v59  ;;  %v609_v5 = vmul.f32 %v2907_v57, %v589_v29 }
 0x2ae   :  { %v561_v31 = vadd.f32 1e-05, %v545_v20  ;;  %v546_v51 = vmul.f32 0.015625, %v530_v23 }
 0x2af   :  { %2115 = vmatprep.mubr.bf16.mxu1 %v655_v26  ;;  %v610_v8 = vmul.f32 %v2907_v57, %v590_v56  ;;  %v629_v22 = vadd.f32 %v2914_v63, %v609_v5 }
 0x2b0   :  { %2298 = vrsqrt.f32 %v561_v31  ;;  %v562_v54 = vadd.f32 1e-05, %v546_v51 }
 0x2b1   :  { %v630_v32 = vadd.f32 %v2914_v63, %v610_v8  ;;  %v645_v35 = vmax.f32 %v629_v22, 0.0 }
 0x2b2   :  { %v2295_v47 = vpop.eup %2294  ;;  %2300 = vrsqrt.f32 %v562_v54 }
 0x2b3   :  { %v646_v33 = vmax.f32 %v630_v32, 0.0  ;;  %v591_v41 = vmul.f32 %v2295_v47, %v2880_v10 }
 0x2b4   :  { %v2297_v59 = vpop.eup %2296 }
 0x2b5   :  { %v656_v44 = vpack.c.bf16 %v646_v33, %v645_v35  ;;  %v592_v50 = vmul.f32 %v2297_v59, %v2886_v16  ;;  %v611_v12 = vmul.f32 %v2907_v57, %v591_v41 }
 0x2b7   :  { %2116 = vmatmul.mubr.bf16.gmra.mrb[8].mxu1 %v656_v44  ;;  %v612_v27 = vmul.f32 %v2907_v57, %v592_v50  ;;  %v631_v53 = vadd.f32 %v2914_v63, %v611_v12 }
 0x2b9   :  { %v632_v39 = vadd.f32 %v2914_v63, %v612_v27  ;;  %v647_v60 = vmax.f32 %v631_v53, 0.0 }
 0x2ba   :  { %v2299_v15 = vpop.eup %2298 }
 0x2bb   :  { %v648_v62 = vmax.f32 %v632_v39, 0.0  ;;  %v593_v1 = vmul.f32 %v2299_v15, %v2894_v21  ;;  %v2009_v21 = vld [vmem:[%s3602_s4] ss:$0 sm:$0xff] }
 0x2bc   :  { %v2301_v4 = vpop.eup %2300  ;;  %v2254_v15 = vld [vmem:[#allocation8] sm:$0xff]  }
 0x2bd   :  { %v657_v10 = vpack.c.bf16 %v648_v62, %v647_v60  ;;  %v594_v42 = vmul.f32 %v2301_v4, %v2900_v25  ;;  %v613_v16 = vmul.f32 %v2907_v57, %v593_v1  ;;  %2123 = vmatprep.subr.bf16.mxu1 %v2254_v15 }
 0x2be   :  { %2124 = vmatpush3.bf16.msra.mxu1 %v2254_v15 }
 0x2bf   :  { %2119 = vmatprep.mubr.bf16.mxu1 %v657_v10  ;;  %v614_v7 = vmul.f32 %v2907_v57, %v594_v42  ;;  %v633_v38 = vadd.f32 %v2914_v63, %v613_v16 }
 0x2c1   :  { %v634_v13 = vadd.f32 %v2914_v63, %v614_v7  ;;  %v649_v14 = vmax.f32 %v633_v38, 0.0 }
 0x2c3   :  { %v650_v45 = vmax.f32 %v634_v13, 0.0 }
 0x2c5   :  { %v658_v2 = vpack.c.bf16 %v650_v45, %v649_v14 }
 0x2c7   :  { %2120 = vmatmul.mubr.bf16.gmra.mrb[12].mxu1 %v658_v2 }
 0x36c   :  { %v2109_v48 = vpop.f32.mrb[0].mxu1 }
 0x36d   :  { %v762_v24 = vpop.f32.mrb[1].mxu1  ;;  %v771_v57 = vadd.f32 %v2109_v48, %v2009_v21 }
 0x36e   :  { %v763_v25 = vadd.f32 %v2009_v21, %v762_v24  ;;  %v2110_v17 = vpop.f32.mrb[2].mxu1 }
 0x36f   :  { %v765_v18 = vpop.f32.mrb[3].mxu1  ;;  %v774_v29 = vadd.f32 %v2110_v17, %v2009_v21 }
 0x370   :  { %v766_v37 = vadd.f32 %v2009_v21, %v765_v18  ;;  %827 = vadd.xlane.f32.xlu0 %v763_v25 }
 0x372   :  { %829 = vadd.xlane.f32.xlu1 %v766_v37 }
 0x374   :  { %831 = vadd.xlane.f32.xlu0 %v771_v57 }
 0x376   :  { %833 = vadd.xlane.f32.xlu1 %v774_v29 }
 0x37a   :  { %v2113_v63 = vpop.f32.mrb[4].mxu1 }
 0x37b   :  { %v778_v19 = vpop.f32.mrb[5].mxu1  ;;  %v787_v5 = vadd.f32 %v2113_v63, %v2009_v21 }
 0x37c   :  { %v779_v20 = vadd.f32 %v2009_v21, %v778_v19  ;;  %v2114_v23 = vpop.f32.mrb[6].mxu1 }
 0x37d   :  { %v781_v26 = vpop.f32.mrb[7].mxu1  ;;  %v2965_v31 = vadd.f32 %v2114_v23, %v2009_v21 }
 0x37e   :  { %v782_v56 = vadd.f32 %v2009_v21, %v781_v26  ;;  %835 = vadd.xlane.f32.xlu0 %v779_v20 }
 0x380   :  { %837 = vadd.xlane.f32.xlu1 %v782_v56 }
 0x382   :  { %839 = vadd.xlane.f32.xlu0 %v787_v5 }
 0x384   :  { %841 = vadd.xlane.f32.xlu1 %v2965_v31 }
 0x38a   :  { %v2117_v51 = vpop.f32.mrb[8].mxu1 }
 0x38b   :  { %v794_v8 = vpop.f32.mrb[9].mxu1  ;;  %v2973_v35 = vadd.f32 %v2117_v51, %v2009_v21 }
 0x38c   :  { %v2968_v22 = vadd.f32 %v2009_v21, %v794_v8  ;;  %v2118_v54 = vpop.f32.mrb[10].mxu1 }
 0x38d   :  { %v797_v32 = vpop.f32.mrb[11].mxu1  ;;  %v2976_v33 = vadd.f32 %v2118_v54, %v2009_v21 }
 0x38e   :  { %v2970_v47 = vadd.f32 %v2009_v21, %v797_v32  ;;  %843 = vadd.xlane.f32.xlu0 %v2968_v22  ;;  %v2255_v32 = vld [vmem:[#allocation8 + $0x8] sm:$0xff]  }
 0x38f   :  { %2125 = vmatprep.subr.bf16.mxu1 %v2255_v32 }
 0x390   :  { %845 = vadd.xlane.f32.xlu1 %v2970_v47  ;;  %2126 = vmatpush3.bf16.msra.mxu1 %v2255_v32 }
 0x392   :  { %847 = vadd.xlane.f32.xlu0 %v2973_v35 }
 0x394   :  { %849 = vadd.xlane.f32.xlu1 %v2976_v33 }
 0x39a   :  { %v2121_v41 = vpop.f32.mrb[12].mxu1 }
 0x39b   :  { %v810_v59 = vpop.f32.mrb[13].mxu1  ;;  %v2985_v53 = vadd.f32 %v2121_v41, %v2009_v21 }
 0x39c   :  { %v2980_v44 = vadd.f32 %v2009_v21, %v810_v59  ;;  %v2122_v50 = vpop.f32.mrb[14].mxu1 }
 0x39d   :  { %v813_v12 = vpop.f32.mrb[15].mxu1  ;;  %v2988_v39 = vadd.f32 %v2122_v50, %v2009_v21  ;;  %v2257_v50 = vld [vmem:[#allocation8 + $0x18] sm:$0xff]  }
 0x39e   :  { %v2982_v27 = vadd.f32 %v2009_v21, %v813_v12  ;;  %851 = vadd.xlane.f32.xlu0 %v2980_v44 }
 0x3a0   :  { %853 = vadd.xlane.f32.xlu1 %v2982_v27 }
 0x3a2   :  { %855 = vadd.xlane.f32.xlu0 %v2985_v53 }
 0x3a4   :  { %857 = vadd.xlane.f32.xlu1 %v2988_v39 }
 0x3fd   :  { %v828_v60 = vpop.xlane.xlu0 %827 }
 0x3fe   :  { %v859_v62 = vmul.f32 0.0078125, %v828_v60 }
 0x3ff   :  { %v830_v1 = vpop.xlane.xlu1 %829 }
 0x400   :  { %v2992_v4 = vsub.f32 %v763_v25, %v859_v62  ;;  %v860_v10 = vmul.f32 0.0078125, %v830_v1  ;;  %v2258_v1 = vld [vmem:[#allocation8 + $0x20] sm:$0xff]  }
 0x401   :  { %v832_v42 = vpop.xlane.xlu0 %831 }
 0x402   :  { %v2994_v16 = vsub.f32 %v766_v37, %v860_v10  ;;  %v861_v7 = vmul.f32 0.0078125, %v832_v42  ;;  %v891_v38 = vmul.f32 %v2992_v4, %v2992_v4 }
 0x403   :  { %v834_v13 = vpop.xlane.xlu1 %833 }
 0x404   :  { %v2998_v14 = vsub.f32 %v771_v57, %v861_v7  ;;  %v862_v45 = vmul.f32 0.0078125, %v834_v13  ;;  %907 = vadd.xlane.f32.xlu0 %v891_v38  ;;  %v892_v2 = vmul.f32 %v2994_v16, %v2994_v16 }
 0x406   :  { %v3002_v21 = vsub.f32 %v774_v29, %v862_v45  ;;  %909 = vadd.xlane.f32.xlu1 %v892_v2  ;;  %v893_v48 = vmul.f32 %v2998_v14, %v2998_v14  ;;  %v2259_v2 = vld [vmem:[#allocation8 + $0x28] sm:$0xff]  }
 0x408   :  { %911 = vadd.xlane.f32.xlu0 %v893_v48  ;;  %v894_v24 = vmul.f32 %v3002_v21, %v3002_v21 }
 0x40a   :  { %913 = vadd.xlane.f32.xlu1 %v894_v24  ;;  %v2260_v24 = vld [vmem:[#allocation8 + $0x30] sm:$0xff]  }
 0x40b   :  { %v836_v25 = vpop.xlane.xlu0 %835 }
 0x40c   :  { %v863_v17 = vmul.f32 0.0078125, %v836_v25  ;;  %v2261_v25 = vld [vmem:[#allocation8 + $0x38] sm:$0xff]  }
 0x40d   :  { %v838_v18 = vpop.xlane.xlu1 %837 }
 0x40e   :  { %v3008_v37 = vsub.f32 %v779_v20, %v863_v17  ;;  %v864_v57 = vmul.f32 0.0078125, %v838_v18 }
 0x40f   :  { %v840_v63 = vpop.xlane.xlu0 %839 }
 0x410   :  { %v3010_v19 = vsub.f32 %v782_v56, %v864_v57  ;;  %v865_v29 = vmul.f32 0.0078125, %v840_v63  ;;  %v895_v23 = vmul.f32 %v3008_v37, %v3008_v37 }
 0x411   :  { %v842_v26 = vpop.xlane.xlu1 %841 }
 0x412   :  { %v3014_v51 = vsub.f32 %v787_v5, %v865_v29  ;;  %v866_v8 = vmul.f32 0.0078125, %v842_v26  ;;  %915 = vadd.xlane.f32.xlu0 %v895_v23  ;;  %v896_v54 = vmul.f32 %v3010_v19, %v3010_v19  ;;  %v2256_v5 = vld [vmem:[#allocation8 + $0x10] sm:$0xff]  }
 0x413   :  { %2127 = vmatprep.subr.bf16.mxu1 %v2256_v5 }
 0x414   :  { %v3019_v20 = vsub.f32 %v2965_v31, %v866_v8  ;;  %917 = vadd.xlane.f32.xlu1 %v896_v54  ;;  %v897_v56 = vmul.f32 %v3014_v51, %v3014_v51  ;;  %2128 = vmatpush3.bf16.msra.mxu1 %v2256_v5 }
 0x415   :  { %2129 = vmatprep.subr.bf16.mxu1 %v2257_v50 }
 0x416   :  { %919 = vadd.xlane.f32.xlu0 %v897_v56  ;;  %v898_v41 = vmul.f32 %v3019_v20, %v3019_v20 }
 0x418   :  { %921 = vadd.xlane.f32.xlu1 %v898_v41  ;;  %2130 = vmatpush3.bf16.msra.mxu1 %v2257_v50 }
 0x419   :  { %2131 = vmatprep.subr.bf16.mxu1 %v2258_v1 }
 0x41b   :  { %v844_v59 = vpop.xlane.xlu0 %843 }
 0x41c   :  { %v867_v12 = vmul.f32 0.0078125, %v844_v59  ;;  %2132 = vmatpush3.bf16.msra.mxu1 %v2258_v1 }
 0x41d   :  { %v846_v15 = vpop.xlane.xlu1 %845  ;;  %2133 = vmatprep.subr.bf16.mxu1 %v2259_v2 }
 0x41e   :  { %v3026_v31 = vsub.f32 %v2968_v22, %v867_v12  ;;  %v868_v60 = vmul.f32 0.0078125, %v846_v15 }
 0x41f   :  { %v848_v62 = vpop.xlane.xlu0 %847 }
 0x420   :  { %v3029_v10 = vsub.f32 %v2970_v47, %v868_v60  ;;  %v869_v42 = vmul.f32 0.0078125, %v848_v62  ;;  %v899_v7 = vmul.f32 %v3026_v31, %v3026_v31  ;;  %2134 = vmatpush3.bf16.msra.mxu1 %v2259_v2  ;;  %v3068_v2 = vld [vmem:[%s3602_s4 + $0x1] ss:$0 sm:$0xff] }
 0x421   :  { %v850_v38 = vpop.xlane.xlu1 %849  ;;  %2135 = vmatprep.subr.bf16.mxu1 %v2260_v24 }
 0x422   :  { %v3034_v13 = vsub.f32 %v2973_v35, %v869_v42  ;;  %v870_v45 = vmul.f32 0.0078125, %v850_v38  ;;  %923 = vadd.xlane.f32.xlu0 %v899_v7  ;;  %v900_v22 = vmul.f32 %v3029_v10, %v3029_v10 }
 0x424   :  { %v3039_v48 = vsub.f32 %v2976_v33, %v870_v45  ;;  %925 = vadd.xlane.f32.xlu1 %v900_v22  ;;  %v901_v47 = vmul.f32 %v3034_v13, %v3034_v13  ;;  %2136 = vmatpush3.bf16.msra.mxu1 %v2260_v24 }
 0x425   :  { %2137 = vmatprep.subr.bf16.mxu1 %v2261_v25 }
 0x426   :  { %927 = vadd.xlane.f32.xlu0 %v901_v47  ;;  %v902_v35 = vmul.f32 %v3039_v48, %v3039_v48 }
 0x428   :  { %929 = vadd.xlane.f32.xlu1 %v902_v35  ;;  %2138 = vmatpush3.bf16.msra.mxu1 %v2261_v25 }
 0x42b   :  { %v852_v17 = vpop.xlane.xlu0 %851 }
 0x42c   :  { %v871_v18 = vmul.f32 0.0078125, %v852_v17 }
 0x42d   :  { %v854_v33 = vpop.xlane.xlu1 %853 }
 0x42e   :  { %v3046_v57 = vsub.f32 %v2980_v44, %v871_v18  ;;  %v872_v63 = vmul.f32 0.0078125, %v854_v33  ;;  %v3074_v33 = vld [vmem:[%s3602_s4 + $0x2] ss:$0 sm:$0xff] }
 0x42f   :  { %v856_v29 = vpop.xlane.xlu0 %855 }
 0x430   :  { %v3049_v23 = vsub.f32 %v2982_v27, %v872_v63  ;;  %v873_v26 = vmul.f32 0.0078125, %v856_v29  ;;  %v903_v8 = vmul.f32 %v3046_v57, %v3046_v57 }
 0x431   :  { %v858_v54 = vpop.xlane.xlu1 %857 }
 0x432   :  { %v3054_v32 = vsub.f32 %v2985_v53, %v873_v26  ;;  %v874_v56 = vmul.f32 0.0078125, %v858_v54  ;;  %931 = vadd.xlane.f32.xlu0 %v903_v8  ;;  %v904_v44 = vmul.f32 %v3049_v23, %v3049_v23 }
 0x434   :  { %v3059_v41 = vsub.f32 %v2988_v39, %v874_v56  ;;  %933 = vadd.xlane.f32.xlu1 %v904_v44  ;;  %v905_v27 = vmul.f32 %v3054_v32, %v3054_v32 }
 0x436   :  { %935 = vadd.xlane.f32.xlu0 %v905_v27  ;;  %v906_v5 = vmul.f32 %v3059_v41, %v3059_v41 }
 0x438   :  { %937 = vadd.xlane.f32.xlu1 %v906_v5 }
 0x491   :  { %v908_v59 = vpop.xlane.xlu0 %907 }
 0x492   :  { %v939_v53 = vmul.f32 0.0078125, %v908_v59 }
 0x493   :  { %v910_v50 = vpop.xlane.xlu1 %909 }
 0x494   :  { %v955_v12 = vadd.f32 1e-05, %v939_v53  ;;  %v940_v15 = vmul.f32 0.0078125, %v910_v50 }
 0x495   :  { %v912_v60 = vpop.xlane.xlu0 %911 }
 0x496   :  { %2302 = vrsqrt.f32 %v955_v12  ;;  %v956_v62 = vadd.f32 1e-05, %v940_v15  ;;  %v941_v1 = vmul.f32 0.0078125, %v912_v60 }
 0x497   :  { %v914_v39 = vpop.xlane.xlu1 %913 }
 0x498   :  { %2304 = vrsqrt.f32 %v956_v62  ;;  %v957_v42 = vadd.f32 1e-05, %v941_v1  ;;  %v942_v7 = vmul.f32 0.0078125, %v914_v39 }
 0x49a   :  { %2306 = vrsqrt.f32 %v957_v42  ;;  %v958_v38 = vadd.f32 1e-05, %v942_v7 }
 0x49c   :  { %2308 = vrsqrt.f32 %v958_v38 }
 0x49f   :  { %v916_v45 = vpop.xlane.xlu0 %915 }
 0x4a0   :  { %v2303_v22 = vpop.eup %2302  ;;  %v943_v47 = vmul.f32 0.0078125, %v916_v45 }
 0x4a1   :  { %v918_v35 = vpop.xlane.xlu1 %917  ;;  %v987_v24 = vmul.f32 %v2303_v22, %v2992_v4 }
 0x4a2   :  { %v2305_v25 = vpop.eup %2304  ;;  %v959_v17 = vadd.f32 1e-05, %v943_v47  ;;  %v944_v18 = vmul.f32 0.0078125, %v918_v35 }
 0x4a3   :  { %v920_v63 = vpop.xlane.xlu0 %919  ;;  %v988_v29 = vmul.f32 %v2305_v25, %v2994_v16  ;;  %v1007_v26 = vmul.f32 %v3068_v2, %v987_v24 }
 0x4a4   :  { %v2307_v8 = vpop.eup %2306  ;;  %2310 = vrsqrt.f32 %v959_v17  ;;  %v960_v54 = vadd.f32 1e-05, %v944_v18  ;;  %v945_v56 = vmul.f32 0.0078125, %v920_v63 }
 0x4a5   :  { %v989_v44 = vmul.f32 %v2307_v8, %v2998_v14  ;;  %v922_v4 = vpop.xlane.xlu1 %921  ;;  %v1008_v27 = vmul.f32 %v3068_v2, %v988_v29  ;;  %v1027_v5 = vadd.f32 %v3074_v33, %v1007_v26 }
 0x4a6   :  { %v2309_v59 = vpop.eup %2308  ;;  %2312 = vrsqrt.f32 %v960_v54  ;;  %v961_v53 = vadd.f32 1e-05, %v945_v56  ;;  %v946_v50 = vmul.f32 0.0078125, %v922_v4 }
 0x4a7   :  { %v1009_v12 = vmul.f32 %v3068_v2, %v989_v44  ;;  %v990_v16 = vmul.f32 %v2309_v59, %v3002_v21  ;;  %v1028_v15 = vadd.f32 %v3074_v33, %v1008_v27  ;;  %v1043_v14 = vmax.f32 %v1027_v5, 0.0 }
 0x4a8   :  { %2314 = vrsqrt.f32 %v961_v53  ;;  %v962_v60 = vadd.f32 1e-05, %v946_v50 }
 0x4a9   :  { %v1010_v62 = vmul.f32 %v3068_v2, %v990_v16  ;;  %v1044_v1 = vmax.f32 %v1028_v15, 0.0  ;;  %v1029_v39 = vadd.f32 %v3074_v33, %v1009_v12 }
 0x4aa   :  { %2316 = vrsqrt.f32 %v962_v60 }
 0x4ab   :  { %v1059_v42 = vpack.c.bf16 %v1044_v1, %v1043_v14  ;;  %v1030_v7 = vadd.f32 %v3074_v33, %v1010_v62  ;;  %v1045_v38 = vmax.f32 %v1029_v39, 0.0 }
 0x4ad   :  { %2139 = vmatprep.mubr.bf16.mxu1 %v1059_v42  ;;  %v1046_v45 = vmax.f32 %v1030_v7, 0.0 }
 0x4ae   :  { %v2311_v22 = vpop.eup %2310 }
 0x4af   :  { %v924_v47 = vpop.xlane.xlu0 %923  ;;  %v1060_v21 = vpack.c.bf16 %v1046_v45, %v1045_v38  ;;  %v991_v35 = vmul.f32 %v2311_v22, %v3008_v37 }
 0x4b0   :  { %v2313_v24 = vpop.eup %2312  ;;  %v947_v25 = vmul.f32 0.0078125, %v924_v47 }
 0x4b1   :  { %2140 = vmatmul.mubr.bf16.vlgmr.msra.gmra.mrb[16].mxu1 %v1060_v21  ;;  %v926_v17 = vpop.xlane.xlu1 %925  ;;  %v992_v18 = vmul.f32 %v2313_v24, %v3010_v19  ;;  %v1011_v63 = vmul.f32 %v3068_v2, %v991_v35 }
 0x4b2   :  { %v2315_v29 = vpop.eup %2314  ;;  %v963_v26 = vadd.f32 1e-05, %v947_v25  ;;  %v948_v8 = vmul.f32 0.0078125, %v926_v17 }
 0x4b3   :  { %v928_v54 = vpop.xlane.xlu0 %927  ;;  %v1012_v56 = vmul.f32 %v3068_v2, %v992_v18  ;;  %v1031_v44 = vadd.f32 %v3074_v33, %v1011_v63  ;;  %v993_v4 = vmul.f32 %v2315_v29, %v3014_v51 }
 0x4b4   :  { %v2317_v27 = vpop.eup %2316  ;;  %2318 = vrsqrt.f32 %v963_v26  ;;  %v964_v37 = vadd.f32 1e-05, %v948_v8  ;;  %v949_v5 = vmul.f32 0.0078125, %v928_v54 }
 0x4b5   :  { %v930_v59 = vpop.xlane.xlu1 %929  ;;  %v1032_v53 = vadd.f32 %v3074_v33, %v1012_v56  ;;  %v994_v19 = vmul.f32 %v2317_v27, %v3019_v20  ;;  %v1013_v50 = vmul.f32 %v3068_v2, %v993_v4  ;;  %v1047_v15 = vmax.f32 %v1031_v44, 0.0 }
 0x4b6   :  { %2320 = vrsqrt.f32 %v964_v37  ;;  %v965_v12 = vadd.f32 1e-05, %v949_v5  ;;  %v950_v16 = vmul.f32 0.0078125, %v930_v59 }
 0x4b7   :  { %v1048_v60 = vmax.f32 %v1032_v53, 0.0  ;;  %v1014_v62 = vmul.f32 %v3068_v2, %v994_v19  ;;  %v1033_v51 = vadd.f32 %v3074_v33, %v1013_v50 }
 0x4b8   :  { %2322 = vrsqrt.f32 %v965_v12  ;;  %v966_v14 = vadd.f32 1e-05, %v950_v16 }
 0x4b9   :  { %v1061_v1 = vpack.c.bf16 %v1048_v60, %v1047_v15  ;;  %v1034_v39 = vadd.f32 %v3074_v33, %v1014_v62  ;;  %v1049_v42 = vmax.f32 %v1033_v51, 0.0 }
 0x4ba   :  { %2324 = vrsqrt.f32 %v966_v14 }
 0x4bb   :  { %2143 = vmatprep.mubr.bf16.mxu1 %v1061_v1  ;;  %v1050_v20 = vmax.f32 %v1034_v39, 0.0 }
 0x4bd   :  { %v1062_v7 = vpack.c.bf16 %v1050_v20, %v1049_v42 }
 0x4be   :  { %v2319_v38 = vpop.eup %2318 }
 0x4bf   :  { %v932_v45 = vpop.xlane.xlu0 %931  ;;  %2144 = vmatmul.mubr.bf16.gmra.mrb[20].mxu1 %v1062_v7  ;;  %v995_v22 = vmul.f32 %v2319_v38, %v3026_v31 }
 0x4c0   :  { %v2321_v47 = vpop.eup %2320  ;;  %v951_v21 = vmul.f32 0.0078125, %v932_v45 }
 0x4c1   :  { %v934_v35 = vpop.xlane.xlu1 %933  ;;  %v996_v24 = vmul.f32 %v2321_v47, %v3029_v10  ;;  %v1015_v25 = vmul.f32 %v3068_v2, %v995_v22 }
 0x4c2   :  { %v2323_v17 = vpop.eup %2322  ;;  %v967_v18 = vadd.f32 1e-05, %v951_v21  ;;  %v952_v63 = vmul.f32 0.0078125, %v934_v35 }
 0x4c3   :  { %v936_v29 = vpop.xlane.xlu0 %935  ;;  %v1016_v26 = vmul.f32 %v3068_v2, %v996_v24  ;;  %v1035_v8 = vadd.f32 %v3074_v33, %v1015_v25  ;;  %v997_v54 = vmul.f32 %v2323_v17, %v3034_v13 }
 0x4c4   :  { %v2325_v56 = vpop.eup %2324  ;;  %2326 = vrsqrt.f32 %v967_v18  ;;  %v968_v31 = vadd.f32 1e-05, %v952_v63  ;;  %v953_v44 = vmul.f32 0.0078125, %v936_v29 }
 0x4c5   :  { %v938_v4 = vpop.xlane.xlu1 %937  ;;  %v1036_v27 = vadd.f32 %v3074_v33, %v1016_v26  ;;  %v998_v10 = vmul.f32 %v2325_v56, %v3039_v48  ;;  %v1017_v37 = vmul.f32 %v3068_v2, %v997_v54  ;;  %v1051_v53 = vmax.f32 %v1035_v8, 0.0 }
 0x4c6   :  { %2328 = vrsqrt.f32 %v968_v31  ;;  %v969_v5 = vadd.f32 1e-05, %v953_v44  ;;  %v954_v59 = vmul.f32 0.0078125, %v938_v4 }
 0x4c7   :  { %v1052_v19 = vmax.f32 %v1036_v27, 0.0  ;;  %v1018_v50 = vmul.f32 %v3068_v2, %v998_v10  ;;  %v1037_v13 = vadd.f32 %v3074_v33, %v1017_v37 }
 0x4c8   :  { %2330 = vrsqrt.f32 %v969_v5  ;;  %v970_v12 = vadd.f32 1e-05, %v954_v59 }
 0x4c9   :  { %v1063_v16 = vpack.c.bf16 %v1052_v19, %v1051_v53  ;;  %v1038_v15 = vadd.f32 %v3074_v33, %v1018_v50  ;;  %v1053_v60 = vmax.f32 %v1037_v13, 0.0 }
 0x4ca   :  { %2332 = vrsqrt.f32 %v970_v12 }
 0x4cb   :  { %2147 = vmatprep.mubr.bf16.mxu1 %v1063_v16  ;;  %v1054_v48 = vmax.f32 %v1038_v15, 0.0 }
 0x4cd   :  { %v1064_v62 = vpack.c.bf16 %v1054_v48, %v1053_v60 }
 0x4ce   :  { %v2327_v51 = vpop.eup %2326 }
 0x4cf   :  { %2148 = vmatmul.mubr.bf16.gmra.mrb[24].mxu1 %v1064_v62  ;;  %v999_v14 = vmul.f32 %v2327_v51, %v3046_v57 }
 0x4d0   :  { %v2329_v1 = vpop.eup %2328 }
 0x4d1   :  { %v1000_v39 = vmul.f32 %v2329_v1, %v3049_v23  ;;  %v1019_v42 = vmul.f32 %v3068_v2, %v999_v14 }
 0x4d2   :  { %v2331_v20 = vpop.eup %2330 }
 0x4d3   :  { %v1020_v7 = vmul.f32 %v3068_v2, %v1000_v39  ;;  %v1039_v38 = vadd.f32 %v3074_v33, %v1019_v42  ;;  %v1001_v45 = vmul.f32 %v2331_v20, %v3054_v32 }
 0x4d4   :  { %v2333_v22 = vpop.eup %2332 }
 0x4d5   :  { %v1040_v47 = vadd.f32 %v3074_v33, %v1020_v7  ;;  %v1002_v21 = vmul.f32 %v2333_v22, %v3059_v41  ;;  %v1021_v35 = vmul.f32 %v3068_v2, %v1001_v45  ;;  %v1055_v57 = vmax.f32 %v1039_v38, 0.0  ;;  %v2020_v41 = vld [vmem:[%s3604_s6] ss:$0 sm:$0xff] }
 0x4d6   :  { %v2262_v45 = vld [vmem:[#allocation10] sm:$0xff]  }
 0x4d7   :  { %v1056_v24 = vmax.f32 %v1040_v47, 0.0  ;;  %v1022_v23 = vmul.f32 %v3068_v2, %v1002_v21  ;;  %v1041_v25 = vadd.f32 %v3074_v33, %v1021_v35  ;;  %2155 = vmatprep.subr.bf16.mxu0 %v2262_v45  ;;  %2187 = vmatprep.subr.bf16.mxu1 %v2262_v45 }
 0x4d8   :  { %2156 = vmatpush3.bf16.msra.mxu0 %v2262_v45  ;;  %2195 = vmatpush3.bf16.msra.mxu1 %v2262_v45 }
 0x4d9   :  { %v1065_v17 = vpack.c.bf16 %v1056_v24, %v1055_v57  ;;  %v1042_v18 = vadd.f32 %v3074_v33, %v1022_v23  ;;  %v1057_v63 = vmax.f32 %v1041_v25, 0.0 }
 0x4db   :  { %2151 = vmatprep.mubr.bf16.mxu1 %v1065_v17  ;;  %v1058_v29 = vmax.f32 %v1042_v18, 0.0 }
 0x4dd   :  { %v1066_v32 = vpack.c.bf16 %v1058_v29, %v1057_v63 }
 0x4df   :  { %2152 = vmatmul.mubr.bf16.gmra.mrb[28].mxu1 %v1066_v32 }
 0x584   :  { %v2141_v26 = vpop.f32.mrb[16].mxu1 }
 0x585   :  { %v1179_v8 = vadd.f32 %v2141_v26, %v2020_v41  ;;  %v1170_v54 = vpop.f32.mrb[17].mxu1 }
 0x586   :  { %v2142_v56 = vpop.f32.mrb[18].mxu1  ;;  %v3128_v44 = vadd.f32 %v2020_v41, %v1170_v54 }
 0x587   :  { %v3126_v31 = vadd.f32 %v2142_v56, %v2020_v41  ;;  %1239 = vadd.xlane.f32.xlu0 %v1179_v8  ;;  %v1173_v2 = vpop.f32.mrb[19].mxu1 }
 0x588   :  { %v3131_v33 = vadd.f32 %v2020_v41, %v1173_v2 }
 0x589   :  { %1241 = vadd.xlane.f32.xlu1 %v3126_v31 }
 0x58b   :  { %1235 = vadd.xlane.f32.xlu0 %v3128_v44 }
 0x58d   :  { %1237 = vadd.xlane.f32.xlu1 %v3131_v33 }
 0x592   :  { %v2145_v4 = vpop.f32.mrb[20].mxu1 }
 0x593   :  { %v1186_v27 = vpop.f32.mrb[21].mxu1  ;;  %v3152_v48 = vadd.f32 %v2145_v4, %v2020_v41 }
 0x594   :  { %v3135_v10 = vadd.f32 %v2020_v41, %v1186_v27  ;;  %v2146_v37 = vpop.f32.mrb[22].mxu1 }
 0x595   :  { %v1189_v5 = vpop.f32.mrb[23].mxu1  ;;  %v3155_v62 = vadd.f32 %v2146_v37, %v2020_v41 }
 0x596   :  { %v3137_v59 = vadd.f32 %v2020_v41, %v1189_v5  ;;  %1243 = vadd.xlane.f32.xlu0 %v3135_v10 }
 0x598   :  { %1245 = vadd.xlane.f32.xlu1 %v3137_v59 }
 0x5a2   :  { %v2149_v53 = vpop.f32.mrb[24].mxu1 }
 0x5a3   :  { %v3141_v19 = vadd.f32 %v2149_v53, %v2020_v41  ;;  %v1202_v50 = vpop.f32.mrb[25].mxu1 }
 0x5a4   :  { %v2150_v13 = vpop.f32.mrb[26].mxu1  ;;  %v3146_v15 = vadd.f32 %v2020_v41, %v1202_v50 }
 0x5a5   :  { %v3143_v12 = vadd.f32 %v2150_v13, %v2020_v41  ;;  %1255 = vadd.xlane.f32.xlu0 %v3141_v19  ;;  %v1205_v16 = vpop.f32.mrb[27].mxu1 }
 0x5a6   :  { %v3149_v60 = vadd.f32 %v2020_v41, %v1205_v16 }
 0x5a7   :  { %1257 = vadd.xlane.f32.xlu1 %v3143_v12 }
 0x5a9   :  { %1251 = vadd.xlane.f32.xlu0 %v3146_v15 }
 0x5ab   :  { %1253 = vadd.xlane.f32.xlu1 %v3149_v60 }
 0x5ad   :  { %1247 = vadd.xlane.f32.xlu0 %v3152_v48 }
 0x5af   :  { %1249 = vadd.xlane.f32.xlu1 %v3155_v62 }
 0x5b2   :  { %v2153_v51 = vpop.f32.mrb[28].mxu1 }
 0x5b3   :  { %v1218_v14 = vpop.f32.mrb[29].mxu1  ;;  %v3164_v7 = vadd.f32 %v2153_v51, %v2020_v41  ;;  %v2263_v51 = vld [vmem:[#allocation10 + $0x8] sm:$0xff]  }
 0x5b4   :  { %v3159_v1 = vadd.f32 %v2020_v41, %v1218_v14  ;;  %v2154_v39 = vpop.f32.mrb[30].mxu1  ;;  %2157 = vmatprep.subr.bf16.mxu0 %v2263_v51  ;;  %2188 = vmatprep.subr.bf16.mxu1 %v2263_v51 }
 0x5b5   :  { %v1221_v42 = vpop.f32.mrb[31].mxu1  ;;  %v3167_v38 = vadd.f32 %v2154_v39, %v2020_v41  ;;  %2158 = vmatpush3.bf16.msra.mxu0 %v2263_v51  ;;  %2196 = vmatpush3.bf16.msra.mxu1 %v2263_v51 }
 0x5b6   :  { %v3161_v20 = vadd.f32 %v2020_v41, %v1221_v42  ;;  %1259 = vadd.xlane.f32.xlu0 %v3159_v1  ;;  %v2265_v42 = vld [vmem:[#allocation10 + $0x18] sm:$0xff]  }
 0x5b8   :  { %1261 = vadd.xlane.f32.xlu1 %v3161_v20 }
 0x5ba   :  { %1263 = vadd.xlane.f32.xlu0 %v3164_v7 }
 0x5bc   :  { %1265 = vadd.xlane.f32.xlu1 %v3167_v38 }
 0x614   :  { %v1240_v22 = vpop.xlane.xlu0 %1239 }
 0x615   :  { %v1269_v47 = vmul.f32 0.015625, %v1240_v22 }
 0x616   :  { %v1242_v21 = vpop.xlane.xlu1 %1241 }
 0x617   :  { %v1285_v35 = vsub.f32 %v1179_v8, %v1269_v47  ;;  %v1270_v57 = vmul.f32 0.015625, %v1242_v21 }
 0x618   :  { %v1236_v24 = vpop.xlane.xlu0 %1235 }
 0x619   :  { %v1286_v23 = vsub.f32 %v3126_v31, %v1270_v57  ;;  %v1267_v25 = vmul.f32 0.015625, %v1236_v24  ;;  %v3174_v17 = vsel %vm464_vm0, %v1285_v35, 0.0 }
 0x61a   :  { %v1238_v18 = vpop.xlane.xlu1 %1237  ;;  %v1317_v63 = vmul.f32 %v3174_v17, %v3174_v17 }
 0x61b   :  { %v1283_v29 = vsub.f32 %v3128_v44, %v1267_v25  ;;  %v1268_v32 = vmul.f32 0.015625, %v1238_v18  ;;  %v3181_v41 = vsel %vm464_vm0, %v1286_v23, 0.0  ;;  %v2266_v25 = vld [vmem:[#allocation10 + $0x20] sm:$0xff]  }
 0x61c   :  { %1335 = vadd.xlane.f32.xlu0 %v1317_v63  ;;  %v1318_v26 = vmul.f32 %v3181_v41, %v3181_v41 }
 0x61d   :  { %v1284_v8 = vsub.f32 %v3131_v33, %v1268_v32  ;;  %v3188_v54 = vsel %vm464_vm0, %v1283_v29, 0.0 }
 0x61e   :  { %1337 = vadd.xlane.f32.xlu1 %v1318_v26  ;;  %v1315_v56 = vmul.f32 %v3188_v54, %v3188_v54 }
 0x61f   :  { %v3194_v31 = vsel %vm464_vm0, %v1284_v8, 0.0 }
 0x620   :  { %1331 = vadd.xlane.f32.xlu0 %v1315_v56  ;;  %v1316_v2 = vmul.f32 %v3194_v31, %v3194_v31 }
 0x622   :  { %1333 = vadd.xlane.f32.xlu1 %v1316_v2  ;;  %v2267_v2 = vld [vmem:[#allocation10 + $0x28] sm:$0xff]  }
 0x623   :  { %v1244_v44 = vpop.xlane.xlu0 %1243 }
 0x624   :  { %v1271_v4 = vmul.f32 0.015625, %v1244_v44 }
 0x625   :  { %v1246_v33 = vpop.xlane.xlu1 %1245 }
 0x626   :  { %v1287_v27 = vsub.f32 %v3135_v10, %v1271_v4  ;;  %v1272_v37 = vmul.f32 0.015625, %v1246_v33  ;;  %v2264_v10 = vld [vmem:[#allocation10 + $0x10] sm:$0xff]  }
 0x627   :  { %2159 = vmatprep.subr.bf16.mxu0 %v2264_v10  ;;  %2189 = vmatprep.subr.bf16.mxu1 %v2264_v10 }
 0x628   :  { %v1288_v5 = vsub.f32 %v3137_v59, %v1272_v37  ;;  %v3202_v53 = vsel %vm464_vm0, %v1287_v27, 0.0  ;;  %2160 = vmatpush3.bf16.msra.mxu0 %v2264_v10  ;;  %2197 = vmatpush3.bf16.msra.mxu1 %v2264_v10 }
 0x629   :  { %v1319_v50 = vmul.f32 %v3202_v53, %v3202_v53  ;;  %2161 = vmatprep.subr.bf16.mxu0 %v2265_v42  ;;  %2190 = vmatprep.subr.bf16.mxu1 %v2265_v42 }
 0x62a   :  { %v3208_v13 = vsel %vm464_vm0, %v1288_v5, 0.0  ;;  %v2268_v5 = vld [vmem:[#allocation10 + $0x30] sm:$0xff]  }
 0x62b   :  { %1339 = vadd.xlane.f32.xlu0 %v1319_v50  ;;  %v1320_v16 = vmul.f32 %v3208_v13, %v3208_v13  ;;  %v2269_v50 = vld [vmem:[#allocation10 + $0x38] sm:$0xff]  }
 0x62c   :  { %2162 = vmatpush3.bf16.msra.mxu0 %v2265_v42  ;;  %2198 = vmatpush3.bf16.msra.mxu1 %v2265_v42 }
 0x62d   :  { %1341 = vadd.xlane.f32.xlu1 %v1320_v16  ;;  %2163 = vmatprep.subr.bf16.mxu0 %v2266_v25 }
 0x62e   :  { %2191 = vmatprep.subr.bf16.mxu1 %v2266_v25 }
 0x630   :  { %2164 = vmatpush3.bf16.msra.mxu0 %v2266_v25  ;;  %2199 = vmatpush3.bf16.msra.mxu1 %v2266_v25 }
 0x631   :  { %2165 = vmatprep.subr.bf16.mxu0 %v2267_v2  ;;  %2192 = vmatprep.subr.bf16.mxu1 %v2267_v2 }
 0x632   :  { %v1256_v59 = vpop.xlane.xlu0 %1255 }
 0x633   :  { %v1277_v14 = vmul.f32 0.015625, %v1256_v59 }
 0x634   :  { %v1258_v39 = vpop.xlane.xlu1 %1257  ;;  %2166 = vmatpush3.bf16.msra.mxu0 %v2267_v2  ;;  %2200 = vmatpush3.bf16.msra.mxu1 %v2267_v2 }
 0x635   :  { %v1293_v45 = vsub.f32 %v3141_v19, %v1277_v14  ;;  %v1278_v22 = vmul.f32 0.015625, %v1258_v39  ;;  %2167 = vmatprep.subr.bf16.mxu0 %v2268_v5  ;;  %2193 = vmatprep.subr.bf16.mxu1 %v2268_v5 }
 0x636   :  { %v1252_v47 = vpop.xlane.xlu0 %1251 }
 0x637   :  { %v1294_v21 = vsub.f32 %v3143_v12, %v1278_v22  ;;  %v1275_v35 = vmul.f32 0.015625, %v1252_v47  ;;  %v3216_v57 = vsel %vm464_vm0, %v1293_v45, 0.0 }
 0x638   :  { %v1254_v24 = vpop.xlane.xlu1 %1253  ;;  %v1325_v23 = vmul.f32 %v3216_v57, %v3216_v57  ;;  %2168 = vmatpush3.bf16.msra.mxu0 %v2268_v5  ;;  %2201 = vmatpush3.bf16.msra.mxu1 %v2268_v5 }
 0x639   :  { %v1291_v19 = vsub.f32 %v3146_v15, %v1275_v35  ;;  %v1276_v18 = vmul.f32 0.015625, %v1254_v24  ;;  %v3223_v63 = vsel %vm464_vm0, %v1294_v21, 0.0  ;;  %2169 = vmatprep.subr.bf16.mxu0 %v2269_v50  ;;  %2194 = vmatprep.subr.bf16.mxu1 %v2269_v50 }
 0x63a   :  { %v1248_v12 = vpop.xlane.xlu0 %1247  ;;  %1351 = vadd.xlane.f32.xlu0 %v1325_v23  ;;  %v1326_v29 = vmul.f32 %v3223_v63, %v3223_v63 }
 0x63b   :  { %v1292_v32 = vsub.f32 %v3149_v60, %v1276_v18  ;;  %v1273_v26 = vmul.f32 0.015625, %v1248_v12  ;;  %v3230_v8 = vsel %vm464_vm0, %v1291_v19, 0.0 }
 0x63c   :  { %1353 = vadd.xlane.f32.xlu1 %v1326_v29  ;;  %v1250_v15 = vpop.xlane.xlu1 %1249  ;;  %v1323_v56 = vmul.f32 %v3230_v8, %v3230_v8  ;;  %2170 = vmatpush3.bf16.msra.mxu0 %v2269_v50 }
 0x63d   :  { %v1289_v44 = vsub.f32 %v3152_v48, %v1273_v26  ;;  %v1274_v4 = vmul.f32 0.015625, %v1250_v15  ;;  %v3237_v60 = vsel %vm464_vm0, %v1292_v32, 0.0  ;;  %2202 = vmatpush3.bf16.msra.mxu1 %v2269_v50 }
 0x63e   :  { %1347 = vadd.xlane.f32.xlu0 %v1323_v56  ;;  %v1324_v33 = vmul.f32 %v3237_v60, %v3237_v60 }
 0x63f   :  { %v1290_v27 = vsub.f32 %v3155_v62, %v1274_v4  ;;  %v3244_v37 = vsel %vm464_vm0, %v1289_v44, 0.0 }
 0x640   :  { %1349 = vadd.xlane.f32.xlu1 %v1324_v33  ;;  %v1321_v48 = vmul.f32 %v3244_v37, %v3244_v37 }
 0x641   :  { %v3250_v16 = vsel %vm464_vm0, %v1290_v27, 0.0 }
 0x642   :  { %1343 = vadd.xlane.f32.xlu0 %v1321_v48  ;;  %v1322_v62 = vmul.f32 %v3250_v16, %v3250_v16 }
 0x643   :  { %v1260_v51 = vpop.xlane.xlu0 %1259 }
 0x644   :  { %v1279_v10 = vmul.f32 0.015625, %v1260_v51  ;;  %1345 = vadd.xlane.f32.xlu1 %v1322_v62 }
 0x645   :  { %v1262_v59 = vpop.xlane.xlu1 %1261 }
 0x646   :  { %v1295_v14 = vsub.f32 %v3159_v1, %v1279_v10  ;;  %v1280_v39 = vmul.f32 0.015625, %v1262_v59 }
 0x647   :  { %v1264_v42 = vpop.xlane.xlu0 %1263 }
 0x648   :  { %v1296_v45 = vsub.f32 %v3161_v20, %v1280_v39  ;;  %v1281_v22 = vmul.f32 0.015625, %v1264_v42  ;;  %v3258_v47 = vsel %vm464_vm0, %v1295_v14, 0.0  ;;  %v3286_v14 = vld [vmem:[%s3604_s6 + $0x1] ss:$0 sm:$0xff] }
 0x649   :  { %v1266_v21 = vpop.xlane.xlu1 %1265  ;;  %v1327_v35 = vmul.f32 %v3258_v47, %v3258_v47 }
 0x64a   :  { %v1297_v24 = vsub.f32 %v3164_v7, %v1281_v22  ;;  %v1282_v23 = vmul.f32 0.015625, %v1266_v21  ;;  %v3265_v1 = vsel %vm464_vm0, %v1296_v45, 0.0 }
 0x64b   :  { %1355 = vadd.xlane.f32.xlu0 %v1327_v35  ;;  %v1328_v20 = vmul.f32 %v3265_v1, %v3265_v1 }
 0x64c   :  { %v1298_v25 = vsub.f32 %v3167_v38, %v1282_v23  ;;  %v3272_v19 = vsel %vm464_vm0, %v1297_v24, 0.0 }
 0x64d   :  { %1357 = vadd.xlane.f32.xlu1 %v1328_v20  ;;  %v1329_v18 = vmul.f32 %v3272_v19, %v3272_v19  ;;  %v3295_v20 = vld [vmem:[%s3604_s6 + $0x2] ss:$0 sm:$0xff] }
 0x64e   :  { %v3278_v7 = vsel %vm464_vm0, %v1298_v25, 0.0 }
 0x64f   :  { %1359 = vadd.xlane.f32.xlu0 %v1329_v18  ;;  %v1330_v12 = vmul.f32 %v3278_v7, %v3278_v7 }
 0x651   :  { %1361 = vadd.xlane.f32.xlu1 %v1330_v12 }
 0x6a9   :  { %v1336_v29 = vpop.xlane.xlu0 %1335 }
 0x6aa   :  { %v1365_v32 = vmul.f32 0.015625, %v1336_v29 }
 0x6ab   :  { %v1338_v38 = vpop.xlane.xlu1 %1337 }
 0x6ac   :  { %v1381_v26 = vadd.f32 1e-05, %v1365_v32  ;;  %v1366_v15 = vmul.f32 0.015625, %v1338_v38 }
 0x6ad   :  { %v1332_v56 = vpop.xlane.xlu0 %1331 }
 0x6ae   :  { %2334 = vrsqrt.f32 %v1381_v26  ;;  %v1382_v2 = vadd.f32 1e-05, %v1366_v15  ;;  %v1363_v44 = vmul.f32 0.015625, %v1332_v56 }
 0x6af   :  { %v1334_v4 = vpop.xlane.xlu1 %1333 }
 0x6b0   :  { %2336 = vrsqrt.f32 %v1382_v2  ;;  %v1379_v33 = vadd.f32 1e-05, %v1363_v44  ;;  %v1364_v27 = vmul.f32 0.015625, %v1334_v4 }
 0x6b2   :  { %2338 = vrsqrt.f32 %v1379_v33  ;;  %v1380_v5 = vadd.f32 1e-05, %v1364_v27 }
 0x6b4   :  { %2340 = vrsqrt.f32 %v1380_v5 }
 0x6b8   :  { %v2335_v48 = vpop.eup %2334  ;;  %v1340_v50 = vpop.xlane.xlu0 %1339 }
 0x6b9   :  { %v1367_v62 = vmul.f32 0.015625, %v1340_v50  ;;  %v1413_v10 = vmul.f32 %v2335_v48, %v3174_v17 }
 0x6ba   :  { %v2337_v51 = vpop.eup %2336  ;;  %v1342_v59 = vpop.xlane.xlu1 %1341 }
 0x6bb   :  { %v1414_v39 = vmul.f32 %v2337_v51, %v3181_v41  ;;  %v1383_v42 = vadd.f32 1e-05, %v1367_v62  ;;  %v1368_v45 = vmul.f32 0.015625, %v1342_v59  ;;  %v1433_v17 = vmul.f32 %v3286_v14, %v1413_v10 }
 0x6bc   :  { %v2339_v22 = vpop.eup %2338 }
 0x6bd   :  { %v1434_v21 = vmul.f32 %v3286_v14, %v1414_v39  ;;  %2342 = vrsqrt.f32 %v1383_v42  ;;  %v1384_v35 = vadd.f32 1e-05, %v1368_v45  ;;  %v1411_v24 = vmul.f32 %v2339_v22, %v3188_v54 }
 0x6be   :  { %v2341_v23 = vpop.eup %2340  ;;  %v1453_v54 = vadd.f32 %v3295_v20, %v1433_v17 }
 0x6bf   :  { %2344 = vrsqrt.f32 %v1384_v35  ;;  %v1412_v41 = vmul.f32 %v2341_v23, %v3194_v31  ;;  %v1431_v25 = vmul.f32 %v3286_v14, %v1411_v24  ;;  %v1454_v18 = vadd.f32 %v3295_v20, %v1434_v21 }
 0x6c0   :  { %v1469_v56 = vmax.f32 %v1453_v54, 0.0 }
 0x6c1   :  { %v1432_v12 = vmul.f32 %v3286_v14, %v1412_v41  ;;  %v1451_v29 = vadd.f32 %v3295_v20, %v1431_v25  ;;  %v1470_v38 = vmax.f32 %v1454_v18, 0.0 }
 0x6c3   :  { %v1452_v32 = vadd.f32 %v3295_v20, %v1432_v12  ;;  %v1467_v26 = vmax.f32 %v1451_v29, 0.0  ;;  %v1484_v33 = vpack.c.bf16 %v1470_v38, %v1469_v56 }
 0x6c5   :  { %v1468_v15 = vmax.f32 %v1452_v32, 0.0 }
 0x6c7   :  { %v2343_v2 = vpop.eup %2342  ;;  %v1352_v44 = vpop.xlane.xlu0 %1351  ;;  %v1483_v4 = vpack.c.bf16 %v1468_v15, %v1467_v26 }
 0x6c8   :  { %v1373_v31 = vmul.f32 0.015625, %v1352_v44  ;;  %v1415_v27 = vmul.f32 %v2343_v2, %v3202_v53 }
 0x6c9   :  { %v2345_v5 = vpop.eup %2344  ;;  %2171 = vmatprep.mubr.bf16.mxu0 %v1483_v4  ;;  %v1354_v48 = vpop.xlane.xlu1 %1353 }
 0x6ca   :  { %v1389_v50 = vadd.f32 1e-05, %v1373_v31  ;;  %v1374_v62 = vmul.f32 0.015625, %v1354_v48  ;;  %2172 = vmatmul.mubr.bf16.vlgmr.msra.gmra.mrb[32].mxu0 %v1484_v33  ;;  %v1416_v51 = vmul.f32 %v2345_v5, %v3208_v13  ;;  %v1435_v10 = vmul.f32 %v3286_v14, %v1415_v27 }
 0x6cb   :  { %v1348_v59 = vpop.xlane.xlu0 %1347 }
 0x6cc   :  { %2346 = vrsqrt.f32 %v1389_v50  ;;  %v1390_v39 = vadd.f32 1e-05, %v1374_v62  ;;  %v1371_v42 = vmul.f32 0.015625, %v1348_v59  ;;  %v1436_v45 = vmul.f32 %v3286_v14, %v1416_v51 }
 0x6cd   :  { %v1350_v22 = vpop.xlane.xlu1 %1349  ;;  %v1455_v21 = vadd.f32 %v3295_v20, %v1435_v10 }
 0x6ce   :  { %2348 = vrsqrt.f32 %v1390_v39  ;;  %v1387_v53 = vadd.f32 1e-05, %v1371_v42  ;;  %v1372_v35 = vmul.f32 0.015625, %v1350_v22  ;;  %v1456_v24 = vadd.f32 %v3295_v20, %v1436_v45 }
 0x6cf   :  { %v1344_v23 = vpop.xlane.xlu0 %1343  ;;  %v1471_v17 = vmax.f32 %v1455_v21, 0.0 }
 0x6d0   :  { %2350 = vrsqrt.f32 %v1387_v53  ;;  %v1388_v13 = vadd.f32 1e-05, %v1372_v35  ;;  %v1369_v41 = vmul.f32 0.015625, %v1344_v23  ;;  %v1472_v25 = vmax.f32 %v1456_v24, 0.0 }
 0x6d1   :  { %v1346_v18 = vpop.xlane.xlu1 %1345 }
 0x6d2   :  { %2352 = vrsqrt.f32 %v1388_v13  ;;  %v1385_v12 = vadd.f32 1e-05, %v1369_v41  ;;  %v1370_v29 = vmul.f32 0.015625, %v1346_v18  ;;  %v1485_v54 = vpack.c.bf16 %v1472_v25, %v1471_v17 }
 0x6d4   :  { %2354 = vrsqrt.f32 %v1385_v12  ;;  %v1386_v32 = vadd.f32 1e-05, %v1370_v29  ;;  %2175 = vmatprep.mubr.bf16.mxu0 %v1485_v54 }
 0x6d6   :  { %v2347_v38 = vpop.eup %2346  ;;  %2356 = vrsqrt.f32 %v1386_v32 }
 0x6d7   :  { %v1421_v15 = vmul.f32 %v2347_v38, %v3216_v57 }
 0x6d8   :  { %v2349_v26 = vpop.eup %2348  ;;  %v1356_v56 = vpop.xlane.xlu0 %1355 }
 0x6d9   :  { %v1422_v2 = vmul.f32 %v2349_v26, %v3223_v63  ;;  %v1375_v44 = vmul.f32 0.015625, %v1356_v56  ;;  %v1441_v62 = vmul.f32 %v3286_v14, %v1421_v15 }
 0x6da   :  { %v2351_v4 = vpop.eup %2350  ;;  %v1358_v31 = vpop.xlane.xlu1 %1357 }
 0x6db   :  { %v1442_v33 = vmul.f32 %v3286_v14, %v1422_v2  ;;  %v1391_v27 = vadd.f32 1e-05, %v1375_v44  ;;  %v1376_v5 = vmul.f32 0.015625, %v1358_v31  ;;  %v1419_v48 = vmul.f32 %v2351_v4, %v3230_v8 }
 0x6dc   :  { %v2353_v50 = vpop.eup %2352  ;;  %v1360_v51 = vpop.xlane.xlu0 %1359  ;;  %v1461_v24 = vadd.f32 %v3295_v20, %v1441_v62 }
 0x6dd   :  { %2358 = vrsqrt.f32 %v1391_v27  ;;  %v1392_v10 = vadd.f32 1e-05, %v1376_v5  ;;  %v1377_v59 = vmul.f32 0.015625, %v1360_v51  ;;  %v1420_v57 = vmul.f32 %v2353_v50, %v3237_v60 }
 0x6de   :  { %v2355_v39 = vpop.eup %2354  ;;  %v1362_v63 = vpop.xlane.xlu1 %1361  ;;  %v1439_v42 = vmul.f32 %v3286_v14, %v1419_v48  ;;  %v1462_v45 = vadd.f32 %v3295_v20, %v1442_v33  ;;  %v1477_v54 = vmax.f32 %v1461_v24, 0.0 }
 0x6df   :  { %2360 = vrsqrt.f32 %v1392_v10  ;;  %v1393_v22 = vadd.f32 1e-05, %v1377_v59  ;;  %v1378_v21 = vmul.f32 0.015625, %v1362_v63  ;;  %v1440_v8 = vmul.f32 %v3286_v14, %v1420_v57 }
 0x6e0   :  { %v2357_v53 = vpop.eup %2356  ;;  %v1459_v35 = vadd.f32 %v3295_v20, %v1439_v42  ;;  %v1417_v23 = vmul.f32 %v2355_v39, %v3244_v37  ;;  %v1478_v41 = vmax.f32 %v1462_v45, 0.0 }
 0x6e1   :  { %2362 = vrsqrt.f32 %v1393_v22  ;;  %v1394_v60 = vadd.f32 1e-05, %v1378_v21  ;;  %v1460_v17 = vadd.f32 %v3295_v20, %v1440_v8  ;;  %v1418_v13 = vmul.f32 %v2357_v53, %v3250_v16 }
 0x6e2   :  { %v1437_v25 = vmul.f32 %v3286_v14, %v1417_v23  ;;  %v1475_v18 = vmax.f32 %v1459_v35, 0.0  ;;  %v1488_v26 = vpack.c.bf16 %v1478_v41, %v1477_v54 }
 0x6e3   :  { %2364 = vrsqrt.f32 %v1394_v60  ;;  %v1476_v12 = vmax.f32 %v1460_v17, 0.0  ;;  %v1438_v29 = vmul.f32 %v3286_v14, %v1418_v13 }
 0x6e4   :  { %v1457_v32 = vadd.f32 %v3295_v20, %v1437_v25 }
 0x6e5   :  { %v1487_v38 = vpack.c.bf16 %v1476_v12, %v1475_v18  ;;  %v1458_v37 = vadd.f32 %v3295_v20, %v1438_v29 }
 0x6e6   :  { %v1473_v56 = vmax.f32 %v1457_v32, 0.0 }
 0x6e7   :  { %v2359_v15 = vpop.eup %2358  ;;  %2179 = vmatprep.mubr.bf16.mxu1 %v1487_v38  ;;  %v1474_v2 = vmax.f32 %v1458_v37, 0.0 }
 0x6e8   :  { %2180 = vmatmul.mubr.bf16.vlgmr.msra.gmra.mrb[32].mxu1 %v1488_v26  ;;  %v1423_v16 = vmul.f32 %v2359_v15, %v3258_v47 }
 0x6e9   :  { %v2361_v44 = vpop.eup %2360  ;;  %v1486_v4 = vpack.c.bf16 %v1474_v2, %v1473_v56 }
 0x6ea   :  { %v1424_v31 = vmul.f32 %v2361_v44, %v3265_v1  ;;  %v1443_v33 = vmul.f32 %v3286_v14, %v1423_v16 }
 0x6eb   :  { %v2363_v27 = vpop.eup %2362  ;;  %2176 = vmatmul.mubr.bf16.gmra.mrb[36].mxu0 %v1486_v4 }
 0x6ec   :  { %v1444_v5 = vmul.f32 %v3286_v14, %v1424_v31  ;;  %v1463_v48 = vadd.f32 %v3295_v20, %v1443_v33  ;;  %v1425_v50 = vmul.f32 %v2363_v27, %v3272_v19 }
 0x6ed   :  { %v2365_v62 = vpop.eup %2364 }
 0x6ee   :  { %v1464_v51 = vadd.f32 %v3295_v20, %v1444_v5  ;;  %v1426_v10 = vmul.f32 %v2365_v62, %v3278_v7  ;;  %v1445_v47 = vmul.f32 %v3286_v14, %v1425_v50  ;;  %v1479_v59 = vmax.f32 %v1463_v48, 0.0  ;;  %v2031_v7 = vld [vmem:[%s3606_s8] ss:$0 sm:$0xff] }
 0x6f0   :  { %v1480_v57 = vmax.f32 %v1464_v51, 0.0  ;;  %v1446_v1 = vmul.f32 %v3286_v14, %v1426_v10  ;;  %v1465_v39 = vadd.f32 %v3295_v20, %v1445_v47 }
 0x6f2   :  { %v1489_v63 = vpack.c.bf16 %v1480_v57, %v1479_v59  ;;  %v1466_v42 = vadd.f32 %v3295_v20, %v1446_v1  ;;  %v1481_v45 = vmax.f32 %v1465_v39, 0.0 }
 0x6f4   :  { %2183 = vmatprep.mubr.bf16.mxu1 %v1489_v63  ;;  %v1482_v22 = vmax.f32 %v1466_v42, 0.0 }
 0x6f6   :  { %v1490_v19 = vpack.c.bf16 %v1482_v22, %v1481_v45 }
 0x6f8   :  { %2184 = vmatmul.mubr.bf16.gmra.mrb[36].mxu1 %v1490_v19 }
 0x79d   :  { %v2173_v21 = vpop.f32.mrb[32].mxu0 }
 0x79e   :  { %v1603_v8 = vadd.f32 %v2173_v21, %v2031_v7  ;;  %v1594_v53 = vpop.f32.mrb[33].mxu0 }
 0x79f   :  { %v2174_v35 = vpop.f32.mrb[34].mxu0  ;;  %v1595_v23 = vadd.f32 %v2031_v7, %v1594_v53 }
 0x7a0   :  { %v1606_v24 = vadd.f32 %v2174_v35, %v2031_v7  ;;  %1663 = vadd.xlane.f32.xlu0 %v1603_v8  ;;  %v1597_v14 = vpop.f32.mrb[35].mxu0 }
 0x7a1   :  { %v1598_v60 = vadd.f32 %v2031_v7, %v1597_v14 }
 0x7a2   :  { %1665 = vadd.xlane.f32.xlu1 %v1606_v24 }
 0x7a4   :  { %1659 = vadd.xlane.f32.xlu0 %v1595_v23 }
 0x7a6   :  { %1661 = vadd.xlane.f32.xlu1 %v1598_v60 }
 0x7bb   :  { %v2181_v20 = vpop.f32.mrb[32].mxu1 }
 0x7bc   :  { %v1626_v17 = vpop.f32.mrb[33].mxu1  ;;  %v3354_v26 = vadd.f32 %v2181_v20, %v2031_v7 }
 0x7bd   :  { %v2182_v13 = vpop.f32.mrb[34].mxu1  ;;  %v3360_v56 = vadd.f32 %v2031_v7, %v1626_v17 }
 0x7be   :  { %v2177_v41 = vpop.f32.mrb[36].mxu0  ;;  %v1629_v25 = vpop.f32.mrb[35].mxu1  ;;  %v3357_v15 = vadd.f32 %v2182_v13, %v2031_v7 }
 0x7bf   :  { %v3343_v18 = vadd.f32 %v2177_v41, %v2031_v7  ;;  %v1610_v12 = vpop.f32.mrb[37].mxu0  ;;  %v3363_v44 = vadd.f32 %v2031_v7, %v1629_v25 }
 0x7c0   :  { %v2178_v29 = vpop.f32.mrb[38].mxu0  ;;  %v3348_v38 = vadd.f32 %v2031_v7, %v1610_v12 }
 0x7c1   :  { %v3345_v54 = vadd.f32 %v2178_v29, %v2031_v7  ;;  %v1613_v32 = vpop.f32.mrb[39].mxu0  ;;  %1671 = vadd.xlane.f32.xlu0 %v3343_v18 }
 0x7c2   :  { %v3351_v37 = vadd.f32 %v2031_v7, %v1613_v32 }
 0x7c3   :  { %1673 = vadd.xlane.f32.xlu1 %v3345_v54 }
 0x7c5   :  { %1667 = vadd.xlane.f32.xlu0 %v3348_v38 }
 0x7c7   :  { %1669 = vadd.xlane.f32.xlu1 %v3351_v37 }
 0x7c9   :  { %1679 = vadd.xlane.f32.xlu0 %v3354_v26 }
 0x7cb   :  { %v2185_v2 = vpop.f32.mrb[36].mxu1  ;;  %1681 = vadd.xlane.f32.xlu1 %v3357_v15 }
 0x7cc   :  { %v1642_v16 = vpop.f32.mrb[37].mxu1  ;;  %v3372_v5 = vadd.f32 %v2185_v2, %v2031_v7 }
 0x7cd   :  { %v2186_v4 = vpop.f32.mrb[38].mxu1  ;;  %1675 = vadd.xlane.f32.xlu0 %v3360_v56  ;;  %v3366_v33 = vadd.f32 %v2031_v7, %v1642_v16 }
 0x7ce   :  { %v1645_v31 = vpop.f32.mrb[39].mxu1  ;;  %v3375_v48 = vadd.f32 %v2186_v4, %v2031_v7 }
 0x7cf   :  { %1677 = vadd.xlane.f32.xlu1 %v3363_v44  ;;  %v3369_v27 = vadd.f32 %v2031_v7, %v1645_v31 }
 0x7d1   :  { %1683 = vadd.xlane.f32.xlu0 %v3366_v33 }
 0x7d3   :  { %1685 = vadd.xlane.f32.xlu1 %v3369_v27 }
 0x7d5   :  { %1687 = vadd.xlane.f32.xlu0 %v3372_v5 }
 0x7d7   :  { %1689 = vadd.xlane.f32.xlu1 %v3375_v48 }
 0x82d   :  { %v1664_v50 = vpop.xlane.xlu0 %1663 }
 0x82e   :  { %v1693_v62 = vmul.f32 0.03125, %v1664_v50 }
 0x82f   :  { %v1666_v51 = vpop.xlane.xlu1 %1665 }
 0x830   :  { %v1709_v10 = vsub.f32 %v1603_v8, %v1693_v62  ;;  %v1694_v47 = vmul.f32 0.03125, %v1666_v51 }
 0x831   :  { %v1660_v59 = vpop.xlane.xlu0 %1659 }
 0x832   :  { %v3382_v57 = vsel %vm1723_vm1, %v1709_v10, 0.0  ;;  %v1710_v1 = vsub.f32 %v1606_v24, %v1694_v47  ;;  %v1691_v39 = vmul.f32 0.03125, %v1660_v59 }
 0x833   :  { %v1662_v63 = vpop.xlane.xlu1 %1661  ;;  %v1744_v42 = vmul.f32 %v3382_v57, %v3382_v57 }
 0x834   :  { %v3388_v45 = vsel %vm1723_vm1, %v1710_v1, 0.0  ;;  %v1707_v22 = vsub.f32 %v1595_v23, %v1691_v39  ;;  %v1692_v19 = vmul.f32 0.03125, %v1662_v63 }
 0x835   :  { %1762 = vadd.xlane.f32.xlu0 %v1744_v42  ;;  %v1745_v7 = vmul.f32 %v3388_v45, %v3388_v45 }
 0x836   :  { %v3394_v21 = vsel %vm1723_vm1, %v1707_v22, 0.0  ;;  %v1708_v8 = vsub.f32 %v1598_v60, %v1692_v19 }
 0x837   :  { %1764 = vadd.xlane.f32.xlu1 %v1745_v7  ;;  %v1742_v53 = vmul.f32 %v3394_v21, %v3394_v21 }
 0x838   :  { %v3400_v35 = vsel %vm1723_vm1, %v1708_v8, 0.0 }
 0x839   :  { %1758 = vadd.xlane.f32.xlu0 %v1742_v53  ;;  %v1743_v24 = vmul.f32 %v3400_v35, %v3400_v35 }
 0x83b   :  { %1760 = vadd.xlane.f32.xlu1 %v1743_v24 }
 0x84e   :  { %v1672_v14 = vpop.xlane.xlu0 %1671 }
 0x84f   :  { %v1697_v23 = vmul.f32 0.03125, %v1672_v14 }
 0x850   :  { %v1674_v20 = vpop.xlane.xlu1 %1673 }
 0x851   :  { %v1713_v17 = vsub.f32 %v3343_v18, %v1697_v23  ;;  %v1698_v13 = vmul.f32 0.03125, %v1674_v20 }
 0x852   :  { %v1668_v60 = vpop.xlane.xlu0 %1667 }
 0x853   :  { %v3407_v41 = vsel %vm1723_vm1, %v1713_v17, 0.0  ;;  %v1714_v25 = vsub.f32 %v3345_v54, %v1698_v13  ;;  %v1695_v12 = vmul.f32 0.03125, %v1668_v60 }
 0x854   :  { %v1670_v29 = vpop.xlane.xlu1 %1669  ;;  %v1748_v32 = vmul.f32 %v3407_v41, %v3407_v41 }
 0x855   :  { %v3414_v2 = vsel %vm1723_vm1, %v1714_v25, 0.0  ;;  %v1711_v16 = vsub.f32 %v3348_v38, %v1695_v12  ;;  %v1696_v18 = vmul.f32 0.03125, %v1670_v29 }
 0x856   :  { %1770 = vadd.xlane.f32.xlu0 %v1748_v32  ;;  %v1680_v4 = vpop.xlane.xlu0 %1679  ;;  %v1749_v31 = vmul.f32 %v3414_v2, %v3414_v2 }
 0x857   :  { %v3421_v54 = vsel %vm1723_vm1, %v1711_v16, 0.0  ;;  %v1712_v50 = vsub.f32 %v3351_v37, %v1696_v18  ;;  %v1701_v62 = vmul.f32 0.03125, %v1680_v4 }
 0x858   :  { %1772 = vadd.xlane.f32.xlu1 %v1749_v31  ;;  %v1682_v51 = vpop.xlane.xlu1 %1681  ;;  %v1746_v10 = vmul.f32 %v3421_v54, %v3421_v54 }
 0x859   :  { %v3428_v38 = vsel %vm1723_vm1, %v1712_v50, 0.0  ;;  %v1717_v47 = vsub.f32 %v3354_v26, %v1701_v62  ;;  %v1702_v59 = vmul.f32 0.03125, %v1682_v51 }
 0x85a   :  { %1766 = vadd.xlane.f32.xlu0 %v1746_v10  ;;  %v1676_v1 = vpop.xlane.xlu0 %1675  ;;  %v1747_v39 = vmul.f32 %v3428_v38, %v3428_v38 }
 0x85b   :  { %v3435_v37 = vsel %vm1723_vm1, %v1717_v47, 0.0  ;;  %v1718_v63 = vsub.f32 %v3357_v15, %v1702_v59  ;;  %v1699_v42 = vmul.f32 0.03125, %v1676_v1 }
 0x85c   :  { %1768 = vadd.xlane.f32.xlu1 %v1747_v39  ;;  %v1678_v22 = vpop.xlane.xlu1 %1677  ;;  %v1752_v19 = vmul.f32 %v3435_v37, %v3435_v37 }
 0x85d   :  { %v3442_v26 = vsel %vm1723_vm1, %v1718_v63, 0.0  ;;  %v1715_v7 = vsub.f32 %v3360_v56, %v1699_v42  ;;  %v1700_v8 = vmul.f32 0.03125, %v1678_v22 }
 0x85e   :  { %1778 = vadd.xlane.f32.xlu0 %v1752_v19  ;;  %v1684_v53 = vpop.xlane.xlu0 %1683  ;;  %v1753_v24 = vmul.f32 %v3442_v26, %v3442_v26 }
 0x85f   :  { %v3449_v15 = vsel %vm1723_vm1, %v1715_v7, 0.0  ;;  %v1716_v14 = vsub.f32 %v3363_v44, %v1700_v8  ;;  %v1703_v23 = vmul.f32 0.03125, %v1684_v53 }
 0x860   :  { %1780 = vadd.xlane.f32.xlu1 %v1753_v24  ;;  %v1686_v20 = vpop.xlane.xlu1 %1685  ;;  %v1750_v17 = vmul.f32 %v3449_v15, %v3449_v15  ;;  %v3491_v24 = vld [vmem:[%s3606_s8 + $0x1] ss:$0 sm:$0xff] }
 0x861   :  { %v3456_v56 = vsel %vm1723_vm1, %v1716_v14, 0.0  ;;  %v1719_v13 = vsub.f32 %v3366_v33, %v1703_v23  ;;  %v1704_v60 = vmul.f32 0.03125, %v1686_v20  ;;  %v3497_v20 = vld [vmem:[%s3606_s8 + $0x2] ss:$0 sm:$0xff] }
 0x862   :  { %1774 = vadd.xlane.f32.xlu0 %v1750_v17  ;;  %v1688_v25 = vpop.xlane.xlu0 %1687  ;;  %v1751_v12 = vmul.f32 %v3456_v56, %v3456_v56 }
 0x863   :  { %v3463_v44 = vsel %vm1723_vm1, %v1719_v13, 0.0  ;;  %v1720_v29 = vsub.f32 %v3369_v27, %v1704_v60  ;;  %v1705_v32 = vmul.f32 0.03125, %v1688_v25 }
 0x864   :  { %1776 = vadd.xlane.f32.xlu1 %v1751_v12  ;;  %v1690_v16 = vpop.xlane.xlu1 %1689  ;;  %v1754_v18 = vmul.f32 %v3463_v44, %v3463_v44 }
 0x865   :  { %v3470_v33 = vsel %vm1723_vm1, %v1720_v29, 0.0  ;;  %v1721_v4 = vsub.f32 %v3372_v5, %v1705_v32  ;;  %v1706_v31 = vmul.f32 0.03125, %v1690_v16 }
 0x866   :  { %1782 = vadd.xlane.f32.xlu0 %v1754_v18  ;;  %v1755_v50 = vmul.f32 %v3470_v33, %v3470_v33 }
 0x867   :  { %v3477_v27 = vsel %vm1723_vm1, %v1721_v4, 0.0  ;;  %v1722_v62 = vsub.f32 %v3375_v48, %v1706_v31 }
 0x868   :  { %1784 = vadd.xlane.f32.xlu1 %v1755_v50  ;;  %v1756_v51 = vmul.f32 %v3477_v27, %v3477_v27 }
 0x869   :  { %v3484_v10 = vsel %vm1723_vm1, %v1722_v62, 0.0 }
 0x86a   :  { %1786 = vadd.xlane.f32.xlu0 %v1756_v51  ;;  %v1757_v5 = vmul.f32 %v3484_v10, %v3484_v10 }
 0x86c   :  { %1788 = vadd.xlane.f32.xlu1 %v1757_v5 }
 0x8c2   :  { %v1763_v47 = vpop.xlane.xlu0 %1762 }
 0x8c3   :  { %v1792_v59 = vmul.f32 0.03125, %v1763_v47 }
 0x8c4   :  { %v1765_v1 = vpop.xlane.xlu1 %1764 }
 0x8c5   :  { %v1808_v39 = vadd.f32 1e-05, %v1792_v59  ;;  %v1793_v63 = vmul.f32 0.03125, %v1765_v1 }
 0x8c6   :  { %v1759_v42 = vpop.xlane.xlu0 %1758 }
 0x8c7   :  { %2366 = vrsqrt.f32 %v1808_v39  ;;  %v1809_v48 = vadd.f32 1e-05, %v1793_v63  ;;  %v1790_v22 = vmul.f32 0.03125, %v1759_v42 }
 0x8c8   :  { %v1761_v19 = vpop.xlane.xlu1 %1760 }
 0x8c9   :  { %2368 = vrsqrt.f32 %v1809_v48  ;;  %v1806_v7 = vadd.f32 1e-05, %v1790_v22  ;;  %v1791_v11 = vmul.f32 0.03125, %v1761_v19 }
 0x8cb   :  { %2370 = vrsqrt.f32 %v1806_v7  ;;  %v1807_v8 = vadd.f32 1e-05, %v1791_v11 }
 0x8cd   :  { %2372 = vrsqrt.f32 %v1807_v8 }
 0x8d1   :  { %v2367_v53 = vpop.eup %2366 }
 0x8d2   :  { %v1840_v14 = vmul.f32 %v2367_v53, %v3382_v57  ;;  %v3507_v57 = vld [vmem:[%s3606_s8 + $0x3] ss:$0 sm:$0xff]  ;;  %s2580_s8 = smov [#allocation11]  }
 0x8d3   :  { %v2369_v23 = vpop.eup %2368  ;;  %s1968_s30 = sshll.u32 %s2580_s8, 4  ;;  %s1969_s30 = int_to_ptr.vmem [resolvable:$true] %s1968_s30 }
 0x8d4   :  { %v1860_v17 = vmul.f32 %v3491_v24, %v1840_v14  ;;  %v1841_v13 = vmul.f32 %v2369_v23, %v3388_v45  ;;  %s2540_s7 = scalar_lea.vmem %s1969_s30, 2048  ;;  %p2545_p13 = scmp.lt.s32.totalorder %s1969_s30, %s1969_s30 }
 0x8d5   :  { %v2371_v60 = vpop.eup %2370  ;;  %p2541_p12 = scmp.ne.s32.totalorder %s1969_s30, %s2540_s7  ;;  %p2546_p0 = scmp.lt.s32.totalorder %s2540_s7, %s2540_s7 }
 0x8d6   :  { %v1880_v25 = vadd.f32 %v3497_v20, %v1860_v17  ;;  %v1861_v12 = vmul.f32 %v3491_v24, %v1841_v13  ;;  %v1838_v29 = vmul.f32 %v2371_v60, %v3394_v21 }
 0x8d7   :  { %v2373_v32 = vpop.eup %2372  ;;  %p2547_p1 = por %p2546_p0, %p2545_p13 }
 0x8d8   :  { %v1896_v16 = vadd.f32 %v1880_v25, %v2721_v34  ;;  %v1881_v18 = vadd.f32 %v3497_v20, %v1861_v12  ;;  %v1858_v4 = vmul.f32 %v3491_v24, %v1838_v29  ;;  %v1839_v45 = vmul.f32 %v2373_v32, %v3400_v35 }
 0x8d9   :  { %p2548_p2 = pnand %p2547_p1, %p2541_p12 }
 0x8da   :  { %v1917_v31 = vadd.f32 %v3507_v57, %v1896_v16  ;;  %v1897_v50 = vadd.f32 %v1881_v18, %v2724_v36  ;;  %v1878_v21 = vadd.f32 %v3497_v20, %v1858_v4  ;;  %v1859_v62 = vmul.f32 %v3491_v24, %v1839_v45 }
 0x8dc   :  { %2374 = vtanh.f32 %v1917_v31  ;;  %v1918_v51 = vadd.f32 %v3507_v57, %v1897_v50  ;;  %v1894_v5 = vadd.f32 %v1878_v21, %v2711_v28  ;;  %v1879_v34 = vadd.f32 %v3497_v20, %v1859_v62 }
 0x8de   :  { %2376 = vtanh.f32 %v1918_v51  ;;  %v1915_v47 = vadd.f32 %v3507_v57, %v1894_v5  ;;  %v1895_v35 = vadd.f32 %v1879_v34, %v2714_v30 }
 0x8e0   :  { %2378 = vtanh.f32 %v1915_v47  ;;  %v1916_v59 = vadd.f32 %v3507_v57, %v1895_v35 }
 0x8e2   :  { %2380 = vtanh.f32 %v1916_v59 }
 0x8e3   :  { %v1771_v36 = vpop.xlane.xlu0 %1770 }
 0x8e4   :  { %v1796_v1 = vmul.f32 0.03125, %v1771_v36 }
 0x8e5   :  { %v1773_v39 = vpop.xlane.xlu1 %1772 }
 0x8e6   :  { %v2375_v63 = vpop.eup %2374  ;;  %v1812_v42 = vadd.f32 1e-05, %v1796_v1  ;;  %v1797_v48 = vmul.f32 0.03125, %v1773_v39 }
 0x8e7   :  { %1949 = vst [vmem:[#allocation11 + $0x10] sm:$0xff] %v2375_v63  ;;  %v1767_v22 = vpop.xlane.xlu0 %1766 }
 0x8e8   :  { %v2377_v28 = vpop.eup %2376  ;;  %2382 = vrsqrt.f32 %v1812_v42  ;;  %v1813_v19 = vadd.f32 1e-05, %v1797_v48  ;;  %v1794_v7 = vmul.f32 0.03125, %v1767_v22 }
 0x8e9   :  { %1950 = vst [vmem:[#allocation11 + $0x18] sm:$0xff] %v2377_v28  ;;  %v1769_v11 = vpop.xlane.xlu1 %1768 }
 0x8ea   :  { %v2379_v8 = vpop.eup %2378  ;;  %2384 = vrsqrt.f32 %v1813_v19  ;;  %v1810_v30 = vadd.f32 1e-05, %v1794_v7  ;;  %v1795_v53 = vmul.f32 0.03125, %v1769_v11 }
 0x8eb   :  { %1947 = vst [vmem:[#allocation11] sm:$0xff] %v2379_v8  ;;  %v1779_v14 = vpop.xlane.xlu0 %1778 }
 0x8ec   :  { %v2381_v23 = vpop.eup %2380  ;;  %2386 = vrsqrt.f32 %v1810_v30  ;;  %v1811_v17 = vadd.f32 1e-05, %v1795_v53  ;;  %v1800_v13 = vmul.f32 0.03125, %v1779_v14 }
 0x8ed   :  { %1948 = vst [vmem:[#allocation11 + $0x8] sm:$0xff] %v2381_v23  ;;  %v1781_v60 = vpop.xlane.xlu1 %1780 }
 0x8ee   :  { %2388 = vrsqrt.f32 %v1811_v17  ;;  %v1816_v25 = vadd.f32 1e-05, %v1800_v13  ;;  %v1801_v12 = vmul.f32 0.03125, %v1781_v60 }
 0x8ef   :  { %v1775_v29 = vpop.xlane.xlu0 %1774 }
 0x8f0   :  { %2390 = vrsqrt.f32 %v1816_v25  ;;  %v1817_v32 = vadd.f32 1e-05, %v1801_v12  ;;  %v1798_v16 = vmul.f32 0.03125, %v1775_v29 }
 0x8f1   :  { %v1777_v18 = vpop.xlane.xlu1 %1776 }
 0x8f2   :  { %v2383_v4 = vpop.eup %2382  ;;  %2392 = vrsqrt.f32 %v1817_v32  ;;  %v1814_v45 = vadd.f32 1e-05, %v1798_v16  ;;  %v1799_v31 = vmul.f32 0.03125, %v1777_v18 }
 0x8f3   :  { %v1844_v50 = vmul.f32 %v2383_v4, %v3407_v41  ;;  %v1783_v21 = vpop.xlane.xlu0 %1782 }
 0x8f4   :  { %v2385_v62 = vpop.eup %2384  ;;  %2394 = vrsqrt.f32 %v1814_v45  ;;  %v1815_v51 = vadd.f32 1e-05, %v1799_v31  ;;  %v1802_v5 = vmul.f32 0.03125, %v1783_v21 }
 0x8f5   :  { %v1864_v34 = vmul.f32 %v3491_v24, %v1844_v50  ;;  %v1845_v47 = vmul.f32 %v2385_v62, %v3414_v2  ;;  %v1785_v35 = vpop.xlane.xlu1 %1784 }
 0x8f6   :  { %v2387_v59 = vpop.eup %2386  ;;  %2396 = vrsqrt.f32 %v1815_v51  ;;  %v1818_v36 = vadd.f32 1e-05, %v1802_v5  ;;  %v1803_v1 = vmul.f32 0.03125, %v1785_v35 }
 0x8f7   :  { %v1884_v39 = vadd.f32 %v3497_v20, %v1864_v34  ;;  %v1865_v63 = vmul.f32 %v3491_v24, %v1845_v47  ;;  %v1842_v41 = vmul.f32 %v2387_v59, %v3421_v54  ;;  %v1787_v42 = vpop.xlane.xlu0 %1786 }
 0x8f8   :  { %v2389_v48 = vpop.eup %2388  ;;  %2398 = vrsqrt.f32 %v1818_v36  ;;  %v1819_v22 = vadd.f32 1e-05, %v1803_v1  ;;  %v1804_v28 = vmul.f32 0.03125, %v1787_v42 }
 0x8f9   :  { %v1900_v19 = vadd.f32 %v1884_v39, %v2741_v46  ;;  %v1885_v2 = vadd.f32 %v3497_v20, %v1865_v63  ;;  %v1862_v7 = vmul.f32 %v3491_v24, %v1842_v41  ;;  %v1843_v11 = vmul.f32 %v2389_v48, %v3428_v38  ;;  %v1789_v8 = vpop.xlane.xlu1 %1788 }
 0x8fa   :  { %v2391_v30 = vpop.eup %2390  ;;  %2400 = vrsqrt.f32 %v1819_v22  ;;  %v1820_v53 = vadd.f32 1e-05, %v1804_v28  ;;  %v1805_v14 = vmul.f32 0.03125, %v1789_v8 }
 0x8fb   :  { %v1921_v54 = vadd.f32 %v3507_v57, %v1900_v19  ;;  %v1901_v23 = vadd.f32 %v1885_v2, %v2746_v49  ;;  %v1882_v17 = vadd.f32 %v3497_v20, %v1862_v7  ;;  %v1863_v13 = vmul.f32 %v3491_v24, %v1843_v11 }
 0x8fc   :  { %v2393_v46 = vpop.eup %2392  ;;  %v1848_v60 = vmul.f32 %v2391_v30, %v3435_v37  ;;  %2402 = vrsqrt.f32 %v1820_v53  ;;  %v1821_v25 = vadd.f32 1e-05, %v1805_v14 }
 0x8fd   :  { %2404 = vtanh.f32 %v1921_v54  ;;  %v1922_v38 = vadd.f32 %v3507_v57, %v1901_v23  ;;  %v1898_v12 = vadd.f32 %v1882_v17, %v2731_v40  ;;  %v1883_v29 = vadd.f32 %v3497_v20, %v1863_v13 }
 0x8fe   :  { %v2395_v32 = vpop.eup %2394  ;;  %v1868_v16 = vmul.f32 %v3491_v24, %v1848_v60  ;;  %v1849_v49 = vmul.f32 %v2393_v46, %v3442_v26  ;;  %2406 = vrsqrt.f32 %v1821_v25 }
 0x8ff   :  { %2408 = vtanh.f32 %v1922_v38  ;;  %v1919_v18 = vadd.f32 %v3507_v57, %v1898_v12  ;;  %v1899_v37 = vadd.f32 %v1883_v29, %v2736_v43  ;;  %v1846_v4 = vmul.f32 %v2395_v32, %v3449_v15 }
 0x900   :  { %v2397_v45 = vpop.eup %2396  ;;  %v1888_v31 = vadd.f32 %v3497_v20, %v1868_v16  ;;  %v1869_v40 = vmul.f32 %v3491_v24, %v1849_v49 }
 0x901   :  { %2410 = vtanh.f32 %v1919_v18  ;;  %v1920_v50 = vadd.f32 %v3507_v57, %v1899_v37  ;;  %v1866_v21 = vmul.f32 %v3491_v24, %v1846_v4  ;;  %v1847_v26 = vmul.f32 %v2397_v45, %v3456_v56 }
 0x902   :  { %v2399_v62 = vpop.eup %2398  ;;  %v1904_v51 = vadd.f32 %v1888_v31, %v2761_v58  ;;  %v1889_v5 = vadd.f32 %v3497_v20, %v1869_v40 }
 0x903   :  { %2412 = vtanh.f32 %v1920_v50  ;;  %v1886_v43 = vadd.f32 %v3497_v20, %v1866_v21  ;;  %v1867_v15 = vmul.f32 %v3491_v24, %v1847_v26  ;;  %v1850_v34 = vmul.f32 %v2399_v62, %v3463_v44 }
 0x904   :  { %v2401_v47 = vpop.eup %2400  ;;  %v1925_v35 = vadd.f32 %v3507_v57, %v1904_v51  ;;  %v1905_v59 = vadd.f32 %v1889_v5, %v2766_v61 }
 0x905   :  { %v1902_v36 = vadd.f32 %v1886_v43, %v2751_v52  ;;  %v1887_v56 = vadd.f32 %v3497_v20, %v1867_v15  ;;  %v1870_v58 = vmul.f32 %v3491_v24, %v1850_v34  ;;  %v1851_v1 = vmul.f32 %v2401_v47, %v3470_v33 }
 0x906   :  { %v2403_v39 = vpop.eup %2402  ;;  %2414 = vtanh.f32 %v1925_v35  ;;  %v1926_v63 = vadd.f32 %v3507_v57, %v1905_v59 }
 0x907   :  { %v2405_v41 = vpop.eup %2404  ;;  %v1923_v44 = vadd.f32 %v3507_v57, %v1902_v36  ;;  %v1903_v42 = vadd.f32 %v1887_v56, %v2756_v55  ;;  %v1890_v48 = vadd.f32 %v3497_v20, %v1870_v58  ;;  %v1871_v61 = vmul.f32 %v3491_v24, %v1851_v1 }
 0x908   :  { %v2407_v52 = vpop.eup %2406  ;;  %1953 = vst [vmem:[#allocation11 + $0x30] sm:$0xff] %v2405_v41  ;;  %2416 = vtanh.f32 %v1926_v63  ;;  %v1852_v22 = vmul.f32 %v2403_v39, %v3477_v27 }
 0x909   :  { %v2409_v28 = vpop.eup %2408  ;;  %2418 = vtanh.f32 %v1923_v44  ;;  %v1924_v33 = vadd.f32 %v3507_v57, %v1903_v42  ;;  %v1906_v19 = vadd.f32 %v1890_v48, %v2771_v0  ;;  %v1891_v2 = vadd.f32 %v3497_v20, %v1871_v61 }
 0x90a   :  { %1954 = vst [vmem:[#allocation11 + $0x38] sm:$0xff] %v2409_v28  ;;  %v1872_v55 = vmul.f32 %v3491_v24, %v1852_v22  ;;  %v1853_v7 = vmul.f32 %v2407_v52, %v3484_v10 }
 0x90b   :  { %v2411_v11 = vpop.eup %2410  ;;  %2420 = vtanh.f32 %v1924_v33  ;;  %v1927_v8 = vadd.f32 %v3507_v57, %v1906_v19  ;;  %v1907_v30 = vadd.f32 %v1891_v2, %v2776_v3 }
 0x90c   :  { %1951 = vst [vmem:[#allocation11 + $0x20] sm:$0xff] %v2411_v11  ;;  %v1892_v27 = vadd.f32 %v3497_v20, %v1872_v55  ;;  %v1873_v53 = vmul.f32 %v3491_v24, %v1853_v7 }
 0x90d   :  { %v2413_v14 = vpop.eup %2412  ;;  %2422 = vtanh.f32 %v1927_v8  ;;  %v1928_v0 = vadd.f32 %v3507_v57, %v1907_v30 }
 0x90e   :  { %1952 = vst [vmem:[#allocation11 + $0x28] sm:$0xff] %v2413_v14  ;;  %v1908_v54 = vadd.f32 %v1892_v27, %v2781_v6  ;;  %v1893_v10 = vadd.f32 %v3497_v20, %v1873_v53 }
 0x90f   :  { %2424 = vtanh.f32 %v1928_v0 }
 0x910   :  { %v2415_v23 = vpop.eup %2414  ;;  %v1929_v17 = vadd.f32 %v3507_v57, %v1908_v54  ;;  %v1909_v3 = vadd.f32 %v1893_v10, %v2786_v9 }
 0x911   :  { %1957 = vst [vmem:[#allocation11 + $0x50] sm:$0xff] %v2415_v23 }
 0x912   :  { %v2417_v13 = vpop.eup %2416  ;;  %2426 = vtanh.f32 %v1929_v17  ;;  %v1930_v24 = vadd.f32 %v3507_v57, %v1909_v3 }
 0x913   :  { %v2419_v46 = vpop.eup %2418  ;;  %1958 = vst [vmem:[#allocation11 + $0x58] sm:$0xff] %v2417_v13 }
 0x914   :  { %1955 = vst [vmem:[#allocation11 + $0x40] sm:$0xff] %v2419_v46  ;;  %2428 = vtanh.f32 %v1930_v24 }
 0x915   :  { %v2421_v60 = vpop.eup %2420 }
 0x916   :  { %1956 = vst [vmem:[#allocation11 + $0x48] sm:$0xff] %v2421_v60 }
 0x917   :  { %v2423_v6 = vpop.eup %2422 }
 0x918   :  { %1959 = vst [vmem:[#allocation11 + $0x60] sm:$0xff] %v2423_v6 }
 0x919   :  { %v2425_v20 = vpop.eup %2424 }
 0x91a   :  { %1960 = vst [vmem:[#allocation11 + $0x68] sm:$0xff] %v2425_v20 }
 0x91c   :  { %v2427_v25 = vpop.eup %2426 }
 0x91d   :  { %1961 = vst [vmem:[#allocation11 + $0x70] sm:$0xff] %v2427_v25 }
 0x91e   :  { %v2429_v9 = vpop.eup %2428 }
 0x91f   :  { %1962 = vst [vmem:[#allocation11 + $0x78] sm:$0xff] %v2429_v9 }
 0x920   :  { %2551 = shalt.err (!%p2548_p2)
}
 0x921   :  { %s2552_s12 = scalar_lea.hbm %s3607_s9, 2048 }
 0x922   :  { %p2553_p3 = scmp.ne.s32.totalorder %s3607_s9, %s2552_s12  ;;  %p2556_p4 = scmp.lt.u32.totalorder %s2552_s12, %s3607_s9 }
 0x924   :  { %p2558_p5 = pnand %p2556_p4, %p2553_p3 }
 0x926   :  { %2561 = shalt.err (!%p2558_p5)
}
 0x927   :  { %1974 = dma.vmem_to_hbm [thread:$0]  %s1969_s30, 2048, %s3607_s9, [#allocation4], %s2571_s19, %s2571_s19, %s2572_s20  }
 0x928   :  { %2568 = dma.done.wait [#allocation4], 2048  }
 0x929   :  { %2569 = vsyncadd [#allocation4], 4294965248 }
 0x92a   :  { %1978 = vsyncpa [#allocation3], 1 }
 0x92b   :  { %1979 = vsyncpa [#allocation6], 1 }
 0x92c   :  { %1980 = vsyncpa [#allocation9], 1 }
 0x92d   :  { %1981 = vsyncpa [#allocation4], 1 }

</bundles_post_ra>
